<compile_context>
chip_gen: v7x
topology: tpu7x:2x2x1
jax: 0.10.0
libtpu: 0.0.40
codegen_flags: <defaults>
</compile_context>

<pallas_src>
import functools

import numpy as np
import jax
import jax.numpy as jnp
from jax.experimental import pallas as pl
from jax.experimental.pallas import tpu as pltpu


# ----------------------------------------------------------------------------
# Padding helper: zero-pad a 2-D array so rows % rm == 0 and cols % cm == 0.
# ----------------------------------------------------------------------------
def _pad2(x, rm=8, cm=128):
    r, c = x.shape
    rp = (-r) % rm
    cp = (-c) % cm
    if rp or cp:
        x = jnp.pad(x, ((0, rp), (0, cp)))
    return x


# ----------------------------------------------------------------------------
# Fused kernel: all `hop` iterations of one graph_inception layer, both sides.
# Per hop (MXU + VPU only, no projection):
#   t_l = net   @ Korder_r       mul_l = t_l * Korder_l
#   t_r = net^T @ Korder_l       mul_r = t_r * Korder_r
#   sum_t_s  += t_s ; sum_mul_s += mul_s ; Korder_s <- t_s + mul_s
# Last hop only (projection deferred out of the loop, exact by linearity):
#   conv_s = sum_t_s @ W1 + sum_mul_s @ W2 + hop*(b1+b2)   [optional ReLU]
# ----------------------------------------------------------------------------
def _gi_kernel(lf_ref, rf_ref, net_hbm, w1_ref, w2_ref, b_ref,
               conv_l_ref, conv_r_ref,
               net_ref, netT_ref, kl_ref, kr_ref,
               st_l_ref, sm_l_ref, st_r_ref, sm_r_ref, dma_sem,
               *, apply_relu, use_bf16_mxu):
    h = pl.program_id(0)
    last = pl.num_programs(0) - 1

    def _mm(a, b):
        if use_bf16_mxu:
            a = a.astype(jnp.bfloat16)
            b = b.astype(jnp.bfloat16)
        return jnp.dot(a, b, preferred_element_type=jnp.float32)

    @pl.when(h == 0)
    def _init():
        # Single HBM->VMEM copy of the adjacency (no pipeline double buffer),
        # plus a one-time transpose reused by every hop.
        cp = pltpu.make_async_copy(net_hbm, net_ref, dma_sem.at[0])
        cp.start()
        cp.wait()
        netT_ref[...] = net_ref[...].T
        kl_ref[...] = lf_ref[...]
        kr_ref[...] = rf_ref[...]
        st_l_ref[...] = jnp.zeros_like(st_l_ref)
        sm_l_ref[...] = jnp.zeros_like(sm_l_ref)
        st_r_ref[...] = jnp.zeros_like(st_r_ref)
        sm_r_ref[...] = jnp.zeros_like(sm_r_ref)

    kl = kl_ref[...]
    kr = kr_ref[...]

    t_l = _mm(net_ref[...], kr)     # network   @ Korder_r
    t_r = _mm(netT_ref[...], kl)    # network^T @ Korder_l (pre-transposed tile)

    mul_l = t_l * kl
    mul_r = t_r * kr

    st_l_ref[...] += t_l
    sm_l_ref[...] += mul_l
    st_r_ref[...] += t_r
    sm_r_ref[...] += mul_r

    kl_ref[...] = t_l + mul_l
    kr_ref[...] = t_r + mul_r

    @pl.when(h == last)
    def _finalize():
        b = b_ref[...]   # already hop * (b1 + b2), lane-padded
        c_l = _mm(st_l_ref[...], w1_ref[...]) + _mm(sm_l_ref[...], w2_ref[...]) + b
        c_r = _mm(st_r_ref[...], w1_ref[...]) + _mm(sm_r_ref[...], w2_ref[...]) + b
        if apply_relu:
            c_l = jnp.maximum(c_l, 0.0)
            c_r = jnp.maximum(c_r, 0.0)
        conv_l_ref[...] = c_l
        conv_r_ref[...] = c_r


def _pick_vmem_limit(resident_bytes):
    """Generation-aware VMEM budget from the actual resident set."""
    try:
        cap = int(pltpu.get_tpu_info().vmem_capacity_bytes)
    except Exception:
        cap = 64 * 1024 * 1024            # conservative (v7x per-core VMEM)
    want = int(resident_bytes) + (4 << 20)  # headroom for compiler scratch
    return int(min(max(want, 8 << 20), int(cap * 0.9)))


# ----------------------------------------------------------------------------
# One graph_inception layer on ALREADY-PADDED inputs. Returns padded outputs.
# ----------------------------------------------------------------------------
def graph_inception_padded(lf, rf, net, w1, b1, w2, b2, hop, *,
                           apply_relu=False, use_bf16_mxu=False):
    Ml, Dp = lf.shape
    Mr = rf.shape[0]
    assert net.shape == (Ml, Mr)

    w1p = _pad2(w1.astype(jnp.float32), 128, 128)
    w2p = _pad2(w2.astype(jnp.float32), 128, 128)
    # match weight contraction dim to the (padded) feature width (exact: zeros)
    if w1p.shape[0] != Dp:
        w1p = jnp.pad(w1p, ((0, Dp - w1p.shape[0]), (0, 0)))
        w2p = jnp.pad(w2p, ((0, Dp - w2p.shape[0]), (0, 0)))
    Dout_p = w1p.shape[1]

    # per-hop bias contributions summed once on the host: hop * (b1 + b2)
    bsum = (float(hop) * (b1 + b2)).astype(jnp.float32).reshape(1, -1)
    bsum = _pad2(bsum, 1, 128)

    f32 = 4
    resident_bytes = f32 * (
        2 * (lf.size + rf.size + w1p.size + w2p.size + bsum.size)  # pipelined ins
        + 2 * (Ml * Dout_p + Mr * Dout_p)                          # outputs
        + 2 * Ml * Mr                                              # net + net^T
        + 3 * (Ml + Mr) * Dp                                       # kl/kr + 4 sums
    )
    vmem_limit = _pick_vmem_limit(resident_bytes)

    grid_spec = pltpu.PrefetchScalarGridSpec(
        num_scalar_prefetch=0,
        grid=(hop,),
        in_specs=[
            pl.BlockSpec((Ml, Dp), lambda h: (0, 0)),        # l_feat
            pl.BlockSpec((Mr, Dp), lambda h: (0, 0)),        # r_feat
            pl.BlockSpec(memory_space=pl.ANY),               # adjacency (HBM)
            pl.BlockSpec((Dp, Dout_p), lambda h: (0, 0)),    # W1
            pl.BlockSpec((Dp, Dout_p), lambda h: (0, 0)),    # W2
            pl.BlockSpec((1, Dout_p), lambda h: (0, 0)),     # hop*(b1+b2)
        ],
        out_specs=(
            pl.BlockSpec((Ml, Dout_p), lambda h: (0, 0)),    # conv_l
            pl.BlockSpec((Mr, Dout_p), lambda h: (0, 0)),    # conv_r
        ),
        scratch_shapes=[
            pltpu.VMEM((Ml, Mr), jnp.float32),               # net (single copy)
            pltpu.VMEM((Mr, Ml), jnp.float32),               # net^T (one-time)
            pltpu.VMEM((Ml, Dp), jnp.float32),               # Korder_l
            pltpu.VMEM((Mr, Dp), jnp.float32),               # Korder_r
            pltpu.VMEM((Ml, Dp), jnp.float32),               # sum_t_l
            pltpu.VMEM((Ml, Dp), jnp.float32),               # sum_mul_l
            pltpu.VMEM((Mr, Dp), jnp.float32),               # sum_t_r
            pltpu.VMEM((Mr, Dp), jnp.float32),               # sum_mul_r
            pltpu.SemaphoreType.DMA((1,)),
        ],
    )

    kernel = functools.partial(_gi_kernel, apply_relu=apply_relu,
                               use_bf16_mxu=use_bf16_mxu)
    conv_l, conv_r = pl.pallas_call(
        kernel,
        out_shape=(jax.ShapeDtypeStruct((Ml, Dout_p), jnp.float32),
                   jax.ShapeDtypeStruct((Mr, Dout_p), jnp.float32)),
        grid_spec=grid_spec,
        compiler_params=pltpu.CompilerParams(
            dimension_semantics=("arbitrary",),   # hop axis carries state
            vmem_limit_bytes=vmem_limit),
    )(lf, rf, net, w1p, w2p, bsum)
    return conv_l, conv_r


# ----------------------------------------------------------------------------
# layers forward:  relu(conv2(relu(conv1(...))))[0]
# Padding is done once; padded layer-1 outputs feed layer-2 directly (zero
# padded adjacency rows/cols keep padded-row garbage out of valid rows).
# ----------------------------------------------------------------------------
def layers_forward(l_feat, r_feat, network, params, hop, *, use_bf16_mxu=False):
    N_l = l_feat.shape[0]
    outdims = params["conv2"][0].shape[1]

    lf = _pad2(l_feat.astype(jnp.float32), 128, 128)
    rf = _pad2(r_feat.astype(jnp.float32), 128, 128)
    net = _pad2(network.astype(jnp.float32), 128, 128)

    y1, z1 = graph_inception_padded(lf, rf, net, *params["conv1"], hop,
                                    apply_relu=True, use_bf16_mxu=use_bf16_mxu)
    y2, _z2 = graph_inception_padded(y1, z1, net, *params["conv2"], hop,
                                     apply_relu=True, use_bf16_mxu=use_bf16_mxu)
    return y2[:N_l, :outdims]


# ----------------------------------------------------------------------------
# Pure-JAX reference (same math as the PyTorch module, no Pallas)
# ----------------------------------------------------------------------------
def _ref_hop(net, x0, x1, w1, b1, w2, b2):
    t = net @ x0
    mul = t * x1
    return (t @ w1 + b1) + (mul @ w2 + b2), t + mul


def _ref_layers(l_feat, r_feat, network, params, hop):
    def gi(lf, rf, w1, b1, w2, b2):
        nl, nr = network, network.T
        kl, kr = lf, rf
        cl = cr = None
        for _ in range(hop):
            c_l, nkl = _ref_hop(nl, kr, kl, w1, b1, w2, b2)
            c_r, nkr = _ref_hop(nr, kl, kr, w1, b1, w2, b2)
            cl = c_l if cl is None else cl + c_l
            cr = c_r if cr is None else cr + c_r
            kl, kr = nkl, nkr
        return cl, cr

    c1l, c1r = gi(l_feat, r_feat, *params["conv1"])
    y1, z1 = jnp.maximum(c1l, 0.0), jnp.maximum(c1r, 0.0)
    c2l, _ = gi(y1, z1, *params["conv2"])
    return jnp.maximum(c2l, 0.0)


# ----------------------------------------------------------------------------
# Deterministic parameter init (torch.nn.Linear-like; W stored (in, out))
# ----------------------------------------------------------------------------
def init_linear(key, din, dout):
    kw, kb = jax.random.split(key)
    bound = 1.0 / np.sqrt(din)
    w = jax.random.uniform(kw, (din, dout), jnp.float32, -bound, bound)
    b = jax.random.uniform(kb, (1, dout), jnp.float32, -bound, bound)
    return w, b


if __name__ == "__main__":
    hop = 2
    inputdims, hiddendims, outputdims = 8, 32, 16
    N_l, N_r = 16, 8

    key = jax.random.PRNGKey(0)
    ks = jax.random.split(key, 7)
    l_feat = jax.random.normal(ks[0], (N_l, inputdims), jnp.float32)
    r_feat = jax.random.normal(ks[1], (N_r, inputdims), jnp.float32)
    # moderate scale keeps the hop-wise multiplicative growth tame
    network = 0.25 * jax.random.normal(ks[2], (N_l, N_r), jnp.float32)

    w1_1, b1_1 = init_linear(ks[3], inputdims, hiddendims)   # conv1.lin1
    w2_1, b2_1 = init_linear(ks[4], inputdims, hiddendims)   # conv1.lin2
    w1_2, b1_2 = init_linear(ks[5], hiddendims, outputdims)  # conv2.lin1
    w2_2, b2_2 = init_linear(ks[6], hiddendims, outputdims)  # conv2.lin2
    params = {
        "conv1": (w1_1, b1_1, w2_1, b2_1),
        "conv2": (w1_2, b1_2, w2_2, b2_2),
    }

    out = layers_forward(l_feat, r_feat, network, params, hop)
    out = jax.block_until_ready(out)

    ref = _ref_layers(l_feat, r_feat, network, params, hop)
    assert out.shape == (N_l, outputdims)
    np.testing.assert_allclose(np.asarray(out), np.asarray(ref),
                               rtol=2e-3, atol=2e-3)

    print("KERNEL_OK")
</pallas_src>

<mosaic_0001>
module attributes {stable_mosaic.version = 11 : i64} {
  func.func @_gi_kernel(%arg0: i32, %arg1: memref<128x128xf32, #tpu.memory_space<vmem>>, %arg2: memref<128x128xf32, #tpu.memory_space<vmem>>, %arg3: memref<128x128xf32, #tpu.memory_space<any>>, %arg4: memref<128x128xf32, #tpu.memory_space<vmem>>, %arg5: memref<128x128xf32, #tpu.memory_space<vmem>>, %arg6: memref<1x128xf32, #tpu.memory_space<vmem>>, %arg7: memref<128x128xf32, #tpu.memory_space<vmem>>, %arg8: memref<128x128xf32, #tpu.memory_space<vmem>>, %arg9: memref<128x128xf32, #tpu.memory_space<vmem>>, %arg10: memref<128x128xf32, #tpu.memory_space<vmem>>, %arg11: memref<128x128xf32, #tpu.memory_space<vmem>>, %arg12: memref<128x128xf32, #tpu.memory_space<vmem>>, %arg13: memref<128x128xf32, #tpu.memory_space<vmem>>, %arg14: memref<128x128xf32, #tpu.memory_space<vmem>>, %arg15: memref<128x128xf32, #tpu.memory_space<vmem>>, %arg16: memref<128x128xf32, #tpu.memory_space<vmem>>, %arg17: memref<1x!tpu.dma_semaphore, #tpu.memory_space<semaphore_mem>>) attributes {dimension_semantics = [#tpu.dimension_semantics<arbitrary>], iteration_bounds = array<i64: 2>, scalar_prefetch = 0 : i64, scratch_operands = 9 : i64, tpu.core_type = #tpu.core_type<tc>, window_params = [{pipeline_mode = #tpu.pipeline_mode<synchronous>, transform_indices = @transform_0, window_bounds = array<i64: 128, 128>}, {pipeline_mode = #tpu.pipeline_mode<synchronous>, transform_indices = @transform_1, window_bounds = array<i64: 128, 128>}, {}, {pipeline_mode = #tpu.pipeline_mode<synchronous>, transform_indices = @transform_3, window_bounds = array<i64: 128, 128>}, {pipeline_mode = #tpu.pipeline_mode<synchronous>, transform_indices = @transform_4, window_bounds = array<i64: 128, 128>}, {pipeline_mode = #tpu.pipeline_mode<synchronous>, transform_indices = @transform_5, window_bounds = array<i64: 1, 128>}, {pipeline_mode = #tpu.pipeline_mode<synchronous>, transform_indices = @transform_6, window_bounds = array<i64: 128, 128>}, {pipeline_mode = #tpu.pipeline_mode<synchronous>, transform_indices = @transform_7, window_bounds = array<i64: 128, 128>}]} {
    %c0_i32 = arith.constant 0 : i32
    %0 = arith.cmpi eq, %arg0, %c0_i32 : i32
    %1 = arith.extui %0 : i1 to i32
    %c0_i32_0 = arith.constant 0 : i32
    %2 = arith.cmpi ne, %1, %c0_i32_0 : i32
    scf.if %2 {
      %c0_i32_30 = arith.constant 0 : i32
      %30 = tpu.memref_slice %arg17[%c0_i32_30] : memref<1x!tpu.dma_semaphore, #tpu.memory_space<semaphore_mem>> -> memref<1x!tpu.dma_semaphore, #tpu.memory_space<semaphore_mem>>
      %31 = tpu.memref_squeeze %30 : memref<1x!tpu.dma_semaphore, #tpu.memory_space<semaphore_mem>> -> memref<!tpu.dma_semaphore, #tpu.memory_space<semaphore_mem>>
      tpu.enqueue_dma source(%arg3 : memref<128x128xf32, #tpu.memory_space<any>>) target(%arg9 : memref<128x128xf32, #tpu.memory_space<vmem>>) target_semaphore(%31 : memref<!tpu.dma_semaphore, #tpu.memory_space<semaphore_mem>>)
      %c0_i32_31 = arith.constant 0 : i32
      %32 = tpu.memref_slice %arg17[%c0_i32_31] : memref<1x!tpu.dma_semaphore, #tpu.memory_space<semaphore_mem>> -> memref<1x!tpu.dma_semaphore, #tpu.memory_space<semaphore_mem>>
      %33 = tpu.memref_squeeze %32 : memref<1x!tpu.dma_semaphore, #tpu.memory_space<semaphore_mem>> -> memref<!tpu.dma_semaphore, #tpu.memory_space<semaphore_mem>>
      tpu.wait_dma2 semaphore(%33 : memref<!tpu.dma_semaphore, #tpu.memory_space<semaphore_mem>>) src(%arg3 : memref<128x128xf32, #tpu.memory_space<any>>) dst(%arg9 : memref<128x128xf32, #tpu.memory_space<vmem>>)
      %c0_32 = arith.constant 0 : index
      %c0_33 = arith.constant 0 : index
      %34 = vector.load %arg9[%c0_32, %c0_33] : memref<128x128xf32, #tpu.memory_space<vmem>>, vector<128x128xf32>
      %35 = tpu.transpose %34, [1, 0] : vector<128x128xf32> -> vector<128x128xf32>
      %c0_34 = arith.constant 0 : index
      %c0_35 = arith.constant 0 : index
      %36 = vector.load %arg10[%c0_34, %c0_35] : memref<128x128xf32, #tpu.memory_space<vmem>>, vector<128x128xf32>
      tpu.vector_store %arg10[%c0_34, %c0_35], %35 {strides = array<i32>} : memref<128x128xf32, #tpu.memory_space<vmem>>, vector<128x128xf32>,
      %c0_36 = arith.constant 0 : index
      %c0_37 = arith.constant 0 : index
      %37 = vector.load %arg1[%c0_36, %c0_37] : memref<128x128xf32, #tpu.memory_space<vmem>>, vector<128x128xf32>
      %c0_38 = arith.constant 0 : index
      %c0_39 = arith.constant 0 : index
      %38 = vector.load %arg11[%c0_38, %c0_39] : memref<128x128xf32, #tpu.memory_space<vmem>>, vector<128x128xf32>
      tpu.vector_store %arg11[%c0_38, %c0_39], %37 {strides = array<i32>} : memref<128x128xf32, #tpu.memory_space<vmem>>, vector<128x128xf32>,
      %c0_40 = arith.constant 0 : index
      %c0_41 = arith.constant 0 : index
      %39 = vector.load %arg2[%c0_40, %c0_41] : memref<128x128xf32, #tpu.memory_space<vmem>>, vector<128x128xf32>
      %c0_42 = arith.constant 0 : index
      %c0_43 = arith.constant 0 : index
      %40 = vector.load %arg12[%c0_42, %c0_43] : memref<128x128xf32, #tpu.memory_space<vmem>>, vector<128x128xf32>
      tpu.vector_store %arg12[%c0_42, %c0_43], %39 {strides = array<i32>} : memref<128x128xf32, #tpu.memory_space<vmem>>, vector<128x128xf32>,
      %cst_44 = arith.constant 0.000000e+00 : f32
      %41 = vector.broadcast %cst_44 : f32 to vector<128x128xf32>
      %c0_45 = arith.constant 0 : index
      %c0_46 = arith.constant 0 : index
      %42 = vector.load %arg13[%c0_45, %c0_46] : memref<128x128xf32, #tpu.memory_space<vmem>>, vector<128x128xf32>
      tpu.vector_store %arg13[%c0_45, %c0_46], %41 {strides = array<i32>} : memref<128x128xf32, #tpu.memory_space<vmem>>, vector<128x128xf32>,
      %cst_47 = arith.constant 0.000000e+00 : f32
      %43 = vector.broadcast %cst_47 : f32 to vector<128x128xf32>
      %c0_48 = arith.constant 0 : index
      %c0_49 = arith.constant 0 : index
      %44 = vector.load %arg14[%c0_48, %c0_49] : memref<128x128xf32, #tpu.memory_space<vmem>>, vector<128x128xf32>
      tpu.vector_store %arg14[%c0_48, %c0_49], %43 {strides = array<i32>} : memref<128x128xf32, #tpu.memory_space<vmem>>, vector<128x128xf32>,
      %cst_50 = arith.constant 0.000000e+00 : f32
      %45 = vector.broadcast %cst_50 : f32 to vector<128x128xf32>
      %c0_51 = arith.constant 0 : index
      %c0_52 = arith.constant 0 : index
      %46 = vector.load %arg15[%c0_51, %c0_52] : memref<128x128xf32, #tpu.memory_space<vmem>>, vector<128x128xf32>
      tpu.vector_store %arg15[%c0_51, %c0_52], %45 {strides = array<i32>} : memref<128x128xf32, #tpu.memory_space<vmem>>, vector<128x128xf32>,
      %cst_53 = arith.constant 0.000000e+00 : f32
      %47 = vector.broadcast %cst_53 : f32 to vector<128x128xf32>
      %c0_54 = arith.constant 0 : index
      %c0_55 = arith.constant 0 : index
      %48 = vector.load %arg16[%c0_54, %c0_55] : memref<128x128xf32, #tpu.memory_space<vmem>>, vector<128x128xf32>
      tpu.vector_store %arg16[%c0_54, %c0_55], %47 {strides = array<i32>} : memref<128x128xf32, #tpu.memory_space<vmem>>, vector<128x128xf32>,
    } else {
    }
    %c0 = arith.constant 0 : index
    %c0_1 = arith.constant 0 : index
    %3 = vector.load %arg11[%c0, %c0_1] : memref<128x128xf32, #tpu.memory_space<vmem>>, vector<128x128xf32>
    %c0_2 = arith.constant 0 : index
    %c0_3 = arith.constant 0 : index
    %4 = vector.load %arg12[%c0_2, %c0_3] : memref<128x128xf32, #tpu.memory_space<vmem>>, vector<128x128xf32>
    %c0_4 = arith.constant 0 : index
    %c0_5 = arith.constant 0 : index
    %5 = vector.load %arg9[%c0_4, %c0_5] : memref<128x128xf32, #tpu.memory_space<vmem>>, vector<128x128xf32>
    %cst = arith.constant dense<0.000000e+00> : vector<128x128xf32>
    %6 = tpu.matmul %5, %4, %cst {dimension_numbers = #tpu.dot_dimension_numbers<[1], [0], [0], [1], [0, 0, 1, 1], [], []>} : vector<128x128xf32>, vector<128x128xf32>, vector<128x128xf32> -> vector<128x128xf32>
    %c0_6 = arith.constant 0 : index
    %c0_7 = arith.constant 0 : index
    %7 = vector.load %arg10[%c0_6, %c0_7] : memref<128x128xf32, #tpu.memory_space<vmem>>, vector<128x128xf32>
    %cst_8 = arith.constant dense<0.000000e+00> : vector<128x128xf32>
    %8 = tpu.matmul %7, %3, %cst_8 {dimension_numbers = #tpu.dot_dimension_numbers<[1], [0], [0], [1], [0, 0, 1, 1], [], []>} : vector<128x128xf32>, vector<128x128xf32>, vector<128x128xf32> -> vector<128x128xf32>
    %9 = arith.mulf %6, %3 : vector<128x128xf32>
    %10 = arith.mulf %8, %4 : vector<128x128xf32>
    %c0_9 = arith.constant 0 : index
    %c0_10 = arith.constant 0 : index
    %11 = vector.load %arg13[%c0_9, %c0_10] : memref<128x128xf32, #tpu.memory_space<vmem>>, vector<128x128xf32>
    %12 = arith.addf %11, %6 : vector<128x128xf32>
    %c0_11 = arith.constant 0 : index
    %c0_12 = arith.constant 0 : index
    %13 = vector.load %arg13[%c0_11, %c0_12] : memref<128x128xf32, #tpu.memory_space<vmem>>, vector<128x128xf32>
    tpu.vector_store %arg13[%c0_11, %c0_12], %12 {strides = array<i32>} : memref<128x128xf32, #tpu.memory_space<vmem>>, vector<128x128xf32>,
    %c0_13 = arith.constant 0 : index
    %c0_14 = arith.constant 0 : index
    %14 = vector.load %arg14[%c0_13, %c0_14] : memref<128x128xf32, #tpu.memory_space<vmem>>, vector<128x128xf32>
    %15 = arith.addf %14, %9 : vector<128x128xf32>
    %c0_15 = arith.constant 0 : index
    %c0_16 = arith.constant 0 : index
    %16 = vector.load %arg14[%c0_15, %c0_16] : memref<128x128xf32, #tpu.memory_space<vmem>>, vector<128x128xf32>
    tpu.vector_store %arg14[%c0_15, %c0_16], %15 {strides = array<i32>} : memref<128x128xf32, #tpu.memory_space<vmem>>, vector<128x128xf32>,
    %c0_17 = arith.constant 0 : index
    %c0_18 = arith.constant 0 : index
    %17 = vector.load %arg15[%c0_17, %c0_18] : memref<128x128xf32, #tpu.memory_space<vmem>>, vector<128x128xf32>
    %18 = arith.addf %17, %8 : vector<128x128xf32>
    %c0_19 = arith.constant 0 : index
    %c0_20 = arith.constant 0 : index
    %19 = vector.load %arg15[%c0_19, %c0_20] : memref<128x128xf32, #tpu.memory_space<vmem>>, vector<128x128xf32>
    tpu.vector_store %arg15[%c0_19, %c0_20], %18 {strides = array<i32>} : memref<128x128xf32, #tpu.memory_space<vmem>>, vector<128x128xf32>,
    %c0_21 = arith.constant 0 : index
    %c0_22 = arith.constant 0 : index
    %20 = vector.load %arg16[%c0_21, %c0_22] : memref<128x128xf32, #tpu.memory_space<vmem>>, vector<128x128xf32>
    %21 = arith.addf %20, %10 : vector<128x128xf32>
    %c0_23 = arith.constant 0 : index
    %c0_24 = arith.constant 0 : index
    %22 = vector.load %arg16[%c0_23, %c0_24] : memref<128x128xf32, #tpu.memory_space<vmem>>, vector<128x128xf32>
    tpu.vector_store %arg16[%c0_23, %c0_24], %21 {strides = array<i32>} : memref<128x128xf32, #tpu.memory_space<vmem>>, vector<128x128xf32>,
    %23 = arith.addf %6, %9 : vector<128x128xf32>
    %c0_25 = arith.constant 0 : index
    %c0_26 = arith.constant 0 : index
    %24 = vector.load %arg11[%c0_25, %c0_26] : memref<128x128xf32, #tpu.memory_space<vmem>>, vector<128x128xf32>
    tpu.vector_store %arg11[%c0_25, %c0_26], %23 {strides = array<i32>} : memref<128x128xf32, #tpu.memory_space<vmem>>, vector<128x128xf32>,
    %25 = arith.addf %8, %10 : vector<128x128xf32>
    %c0_27 = arith.constant 0 : index
    %c0_28 = arith.constant 0 : index
    %26 = vector.load %arg12[%c0_27, %c0_28] : memref<128x128xf32, #tpu.memory_space<vmem>>, vector<128x128xf32>
    tpu.vector_store %arg12[%c0_27, %c0_28], %25 {strides = array<i32>} : memref<128x128xf32, #tpu.memory_space<vmem>>, vector<128x128xf32>,
    %c1_i32 = arith.constant 1 : i32
    %27 = arith.cmpi eq, %arg0, %c1_i32 : i32
    %28 = arith.extui %27 : i1 to i32
    %c0_i32_29 = arith.constant 0 : i32
    %29 = arith.cmpi ne, %28, %c0_i32_29 : i32
    scf.if %29 {
      %c0_30 = arith.constant 0 : index
      %c0_31 = arith.constant 0 : index
      %30 = vector.load %arg6[%c0_30, %c0_31] : memref<1x128xf32, #tpu.memory_space<vmem>>, vector<1x128xf32>
      %c0_32 = arith.constant 0 : index
      %c0_33 = arith.constant 0 : index
      %31 = vector.load %arg13[%c0_32, %c0_33] : memref<128x128xf32, #tpu.memory_space<vmem>>, vector<128x128xf32>
      %c0_34 = arith.constant 0 : index
      %c0_35 = arith.constant 0 : index
      %32 = vector.load %arg4[%c0_34, %c0_35] : memref<128x128xf32, #tpu.memory_space<vmem>>, vector<128x128xf32>
      %cst_36 = arith.constant dense<0.000000e+00> : vector<128x128xf32>
      %33 = tpu.matmul %31, %32, %cst_36 {dimension_numbers = #tpu.dot_dimension_numbers<[1], [0], [0], [1], [0, 0, 1, 1], [], []>} : vector<128x128xf32>, vector<128x128xf32>, vector<128x128xf32> -> vector<128x128xf32>
      %c0_37 = arith.constant 0 : index
      %c0_38 = arith.constant 0 : index
      %34 = vector.load %arg14[%c0_37, %c0_38] : memref<128x128xf32, #tpu.memory_space<vmem>>, vector<128x128xf32>
      %c0_39 = arith.constant 0 : index
      %c0_40 = arith.constant 0 : index
      %35 = vector.load %arg5[%c0_39, %c0_40] : memref<128x128xf32, #tpu.memory_space<vmem>>, vector<128x128xf32>
      %cst_41 = arith.constant dense<0.000000e+00> : vector<128x128xf32>
      %36 = tpu.matmul %34, %35, %cst_41 {dimension_numbers = #tpu.dot_dimension_numbers<[1], [0], [0], [1], [0, 0, 1, 1], [], []>} : vector<128x128xf32>, vector<128x128xf32>, vector<128x128xf32> -> vector<128x128xf32>
      %37 = arith.addf %33, %36 : vector<128x128xf32>
      %38 = vector.broadcast %30 : vector<1x128xf32> to vector<128x128xf32>
      %39 = arith.addf %37, %38 : vector<128x128xf32>
      %c0_42 = arith.constant 0 : index
      %c0_43 = arith.constant 0 : index
      %40 = vector.load %arg15[%c0_42, %c0_43] : memref<128x128xf32, #tpu.memory_space<vmem>>, vector<128x128xf32>
      %c0_44 = arith.constant 0 : index
      %c0_45 = arith.constant 0 : index
      %41 = vector.load %arg4[%c0_44, %c0_45] : memref<128x128xf32, #tpu.memory_space<vmem>>, vector<128x128xf32>
      %cst_46 = arith.constant dense<0.000000e+00> : vector<128x128xf32>
      %42 = tpu.matmul %40, %41, %cst_46 {dimension_numbers = #tpu.dot_dimension_numbers<[1], [0], [0], [1], [0, 0, 1, 1], [], []>} : vector<128x128xf32>, vector<128x128xf32>, vector<128x128xf32> -> vector<128x128xf32>
      %c0_47 = arith.constant 0 : index
      %c0_48 = arith.constant 0 : index
      %43 = vector.load %arg16[%c0_47, %c0_48] : memref<128x128xf32, #tpu.memory_space<vmem>>, vector<128x128xf32>
      %c0_49 = arith.constant 0 : index
      %c0_50 = arith.constant 0 : index
      %44 = vector.load %arg5[%c0_49, %c0_50] : memref<128x128xf32, #tpu.memory_space<vmem>>, vector<128x128xf32>
      %cst_51 = arith.constant dense<0.000000e+00> : vector<128x128xf32>
      %45 = tpu.matmul %43, %44, %cst_51 {dimension_numbers = #tpu.dot_dimension_numbers<[1], [0], [0], [1], [0, 0, 1, 1], [], []>} : vector<128x128xf32>, vector<128x128xf32>, vector<128x128xf32> -> vector<128x128xf32>
      %46 = arith.addf %42, %45 : vector<128x128xf32>
      %47 = vector.broadcast %30 : vector<1x128xf32> to vector<128x128xf32>
      %48 = arith.addf %46, %47 : vector<128x128xf32>
      %cst_52 = arith.constant 0.000000e+00 : f32
      %49 = vector.broadcast %cst_52 : f32 to vector<128x128xf32>
      %50 = arith.maximumf %39, %49 : vector<128x128xf32>
      %cst_53 = arith.constant 0.000000e+00 : f32
      %51 = vector.broadcast %cst_53 : f32 to vector<128x128xf32>
      %52 = arith.maximumf %48, %51 : vector<128x128xf32>
      %c0_54 = arith.constant 0 : index
      %c0_55 = arith.constant 0 : index
      %53 = vector.load %arg7[%c0_54, %c0_55] : memref<128x128xf32, #tpu.memory_space<vmem>>, vector<128x128xf32>
      tpu.vector_store %arg7[%c0_54, %c0_55], %50 {strides = array<i32>} : memref<128x128xf32, #tpu.memory_space<vmem>>, vector<128x128xf32>,
      %c0_56 = arith.constant 0 : index
      %c0_57 = arith.constant 0 : index
      %54 = vector.load %arg8[%c0_56, %c0_57] : memref<128x128xf32, #tpu.memory_space<vmem>>, vector<128x128xf32>
      tpu.vector_store %arg8[%c0_56, %c0_57], %52 {strides = array<i32>} : memref<128x128xf32, #tpu.memory_space<vmem>>, vector<128x128xf32>,
    } else {
    }
    return
  }
  func.func @transform_0(%arg0: i32) -> (i32, i32) {
    %c0_i32 = arith.constant 0 : i32
    %c0_i32_0 = arith.constant 0 : i32
    %c0_i32_1 = arith.constant 0 : i32
    return %c0_i32, %c0_i32_0 : i32, i32
  }
  func.func @transform_1(%arg0: i32) -> (i32, i32) {
    %c0_i32 = arith.constant 0 : i32
    %c0_i32_0 = arith.constant 0 : i32
    %c0_i32_1 = arith.constant 0 : i32
    return %c0_i32, %c0_i32_0 : i32, i32
  }
  func.func @transform_3(%arg0: i32) -> (i32, i32) {
    %c0_i32 = arith.constant 0 : i32
    %c0_i32_0 = arith.constant 0 : i32
    %c0_i32_1 = arith.constant 0 : i32
    return %c0_i32, %c0_i32_0 : i32, i32
  }
  func.func @transform_4(%arg0: i32) -> (i32, i32) {
    %c0_i32 = arith.constant 0 : i32
    %c0_i32_0 = arith.constant 0 : i32
    %c0_i32_1 = arith.constant 0 : i32
    return %c0_i32, %c0_i32_0 : i32, i32
  }
  func.func @transform_5(%arg0: i32) -> (i32, i32) {
    %c0_i32 = arith.constant 0 : i32
    %c0_i32_0 = arith.constant 0 : i32
    %c0_i32_1 = arith.constant 0 : i32
    return %c0_i32, %c0_i32_0 : i32, i32
  }
  func.func @transform_6(%arg0: i32) -> (i32, i32) {
    %c0_i32 = arith.constant 0 : i32
    %c0_i32_0 = arith.constant 0 : i32
    %c0_i32_1 = arith.constant 0 : i32
    return %c0_i32, %c0_i32_0 : i32, i32
  }
  func.func @transform_7(%arg0: i32) -> (i32, i32) {
    %c0_i32 = arith.constant 0 : i32
    %c0_i32_0 = arith.constant 0 : i32
    %c0_i32_1 = arith.constant 0 : i32
    return %c0_i32, %c0_i32_0 : i32, i32
  }
}

</mosaic_0001>

<bundles_post_ra>
// kernel: tpu_custom_call.1
= control target key start
LH: loop header
LB: loop body
LE: loop exit
PB: predicated region body
PF: predicated region fallthrough
CT: control target
= control target key end

     0   :  { %13 = vsyncpa [#allocation12], 0  ;;  %s3573_s0 = inlined_call_operand.hbm [shape: f32[128,128], index: 0, kind: input, shape index: {}]   ;;  %s3574_s1 = inlined_call_operand.hbm [shape: f32[128,128], index: 1, kind: input, shape index: {}]   ;;  %s3575_s2 = inlined_call_operand.hbm [shape: f32[128,128], index: 2, kind: input, shape index: {}]   ;;  %s3576_s3 = inlined_call_operand.hbm [shape: f32[128,128], index: 3, kind: input, shape index: {}]   ;;  %s3577_s4 = inlined_call_operand.hbm [shape: f32[128,128], index: 4, kind: input, shape index: {}]   ;;  %s3578_s5 = inlined_call_operand.vmem [shape: f32[1,128], index: 5, kind: input, shape index: {}]   ;;  %s3579_s6 = inlined_call_operand.hbm [shape: f32[128,128], index: 6, kind: output, shape index: {0}]   ;;  %s3580_s7 = inlined_call_operand.hbm [shape: f32[128,128], index: 7, kind: output, shape index: {1}]  }
   0x1   :  { %14 = vsyncpa [#allocation15], 0 }
   0x2   :  { %15 = vsyncpa [#allocation18], 0 }
   0x3   :  { %16 = vsyncpa [#allocation13], 0 }
   0x4   :  { %17 = vsyncpa [#allocation21], 0  ;;  %s3129_s24 = smov 0  }
   0x5 LB: > { %s3135_s25 = sadd.s32 4294967295, %s3075_s24   ;;  %p2020_p0 = scmp.ge.s32.totalorder %s3075_s24, 1  ;;  %s3075_s24 = sphi %s3129_s24, %s23_s24  }
   0x6   : > { %p175_p1 = scmp.lt.s32.totalorder %s3075_s24, 3  ;;  %p3581_p3 = scmp.eq.s32.totalorder %s3135_s25, 0 }
   0x7   : > { %s3077_s27 = smov [#allocation14]   ;;  %s3078_s29 = smov [#allocation11]  }
   0x8   : > { %p3141_p4 = pnand %p2020_p0, %p175_p1  ;;  %s200_s28 = sshll.u32 %s3077_s27, 4  ;;  %s3145_s28 = int_to_ptr.vmem [resolvable:$true] %s200_s28 }
   0x9   : > { %s187_s30 = sshll.u32 %s3078_s29, 4  ;;  %s3079_s9 = smov [#allocation16]   ;;  %s3149_s30 = int_to_ptr.vmem [resolvable:$true] %s187_s30 }
   0xa   : > { %s3583_s26 = scalar_select %p3141_p4, 1, 0 }
   0xb   : > { %p2816_p5 = pneg %p3141_p4  ;;  %s213_s10 = sshll.u32 %s3079_s9, 4  ;;  %s3157_s10 = int_to_ptr.vmem [resolvable:$true] %s213_s10 }
   0xc   : > { %s3080_s11 = smov [#allocation17]   ;;  %s2861_s15 = scalar_lea.hbm %s3574_s1, 2048 }
   0xd   : > { %p3153_p6 = pnand %p3581_p3, %p2816_p5  ;;  %s3159_s12 = sshll.u32 %s3080_s11, 4  ;;  %s227_s12 = int_to_ptr.vmem [resolvable:$true] %s3159_s12 }
   0xe   : > { %p2862_p7 = scmp.ne.s32.totalorder %s3574_s1, %s2861_s15  ;;  %p2868_p11 = scmp.lt.u32.totalorder %s2861_s15, %s3574_s1 }
   0xf   : > { %p3169_p8 = pneg %p3153_p6 }
  0x11   : > { %p2864_p9 = pnand %p3169_p8, %p2862_p7 }
  0x13   : > { %p2865_p10 = pneg %p2864_p9 }
  0x15   : > { %p2870_p12 = pnand %p2868_p11, %p2865_p10 }
  0x17   : > { %2873 = shalt.err (!%p2870_p12)
}
  0x18   : > { %s2874_s21 = scalar_lea.vmem %s3145_s28, 2048  ;;  %p2882_p5 = scmp.lt.s32.totalorder %s3145_s28, %s3145_s28 }
  0x19   : > { %p2875_p13 = scmp.ne.s32.totalorder %s3145_s28, %s2874_s21  ;;  %p2883_p2 = scmp.lt.s32.totalorder %s2874_s21, %s2874_s21 }
  0x1b   : > { %p2877_p0 = pnand %p2875_p13, %p3169_p8  ;;  %p2884_p7 = por %p2883_p2, %p2882_p5 }
  0x1d   : > { %p2878_p1 = pneg %p2877_p0 }
  0x1f   : > { %p2885_p9 = pnand %p2884_p7, %p2878_p1 }
  0x21   : > { %2888 = shalt.err (!%p2885_p9)
}
  0x22   : > { %s3081_s22 = smov 128   ;;  %s3082_s23 = smov 8  }
  0x23   : > { %2822 = dma.hbm_to_vmem [thread:$0]  (!%p3153_p6), %s3574_s1, 2048, %s3145_s28, [#allocation15], %s3081_s22, %s3081_s22, %s3082_s23  }
  0x24   : > { %s2889_s13 = scalar_lea.hbm %s3573_s0, 2048 }
  0x25   : > { %p2890_p2 = scmp.ne.s32.totalorder %s3573_s0, %s2889_s13  ;;  %p2896_p12 = scmp.lt.u32.totalorder %s2889_s13, %s3573_s0 }
  0x27   : > { %p2892_p10 = pnand %p2890_p2, %p3169_p8 }
  0x29   : > { %p2893_p11 = pneg %p2892_p10 }
  0x2b   : > { %p2898_p13 = pnand %p2896_p12, %p2893_p11 }
  0x2d   : > { %2901 = shalt.err (!%p2898_p13)
}
  0x2e   : > { %s2902_s28 = scalar_lea.vmem %s3149_s30, 2048  ;;  %p2910_p7 = scmp.lt.s32.totalorder %s3149_s30, %s3149_s30 }
  0x2f   : > { %p2903_p0 = scmp.ne.s32.totalorder %s3149_s30, %s2902_s28  ;;  %p2911_p9 = scmp.lt.s32.totalorder %s2902_s28, %s2902_s28 }
  0x31   : > { %p2905_p1 = pnand %p2903_p0, %p3169_p8  ;;  %p2912_p2 = por %p2911_p9, %p2910_p7 }
  0x33   : > { %p2906_p5 = pneg %p2905_p1 }
  0x35   : > { %p2913_p10 = pnand %p2912_p2, %p2906_p5 }
  0x37   : > { %2916 = shalt.err (!%p2913_p10)
}
  0x38   : > { %2819 = dma.hbm_to_vmem [thread:$0]  (!%p3153_p6), %s3573_s0, 2048, %s3149_s30, [#allocation12], %s3081_s22, %s3081_s22, %s3082_s23  }
  0x39   : > { %s2917_s29 = scalar_lea.hbm %s3576_s3, 2048 }
  0x3a   : > { %p2918_p11 = scmp.ne.s32.totalorder %s3576_s3, %s2917_s29  ;;  %p2924_p0 = scmp.lt.u32.totalorder %s2917_s29, %s3576_s3 }
  0x3c   : > { %p2920_p12 = pnand %p2918_p11, %p3169_p8 }
  0x3e   : > { %p2921_p13 = pneg %p2920_p12 }
  0x40   : > { %p2926_p1 = pnand %p2924_p0, %p2921_p13 }
  0x42   : > { %2929 = shalt.err (!%p2926_p1)
}
  0x43   : > { %s2930_s30 = scalar_lea.vmem %s3157_s10, 2048  ;;  %p2938_p2 = scmp.lt.s32.totalorder %s3157_s10, %s3157_s10 }
  0x44   : > { %p2931_p5 = scmp.ne.s32.totalorder %s3157_s10, %s2930_s30  ;;  %p2939_p10 = scmp.lt.s32.totalorder %s2930_s30, %s2930_s30 }
  0x46   : > { %p2933_p7 = pnand %p2931_p5, %p3169_p8  ;;  %p2940_p11 = por %p2939_p10, %p2938_p2 }
  0x48   : > { %p2934_p9 = pneg %p2933_p7 }
  0x4a   : > { %p2941_p12 = pnand %p2940_p11, %p2934_p9 }
  0x4c   : > { %2944 = shalt.err (!%p2941_p12)
}
  0x4d   : > { %2825 = dma.hbm_to_vmem [thread:$0]  (!%p3153_p6), %s3576_s3, 2048, %s3157_s10, [#allocation15], %s3081_s22, %s3081_s22, %s3082_s23  }
  0x4e   : > { %s2945_s19 = scalar_lea.hbm %s3577_s4, 2048 }
  0x4f   : > { %p2946_p13 = scmp.ne.s32.totalorder %s3577_s4, %s2945_s19  ;;  %p2952_p5 = scmp.lt.u32.totalorder %s2945_s19, %s3577_s4 }
  0x51   : > { %p2948_p0 = pnand %p2946_p13, %p3169_p8 }
  0x53   : > { %p2949_p1 = pneg %p2948_p0 }
  0x55   : > { %p2954_p7 = pnand %p2952_p5, %p2949_p1 }
  0x57   : > { %2957 = shalt.err (!%p2954_p7)
}
  0x58   : > { %s2958_s9 = scalar_lea.vmem %s227_s12, 2048  ;;  %p2966_p11 = scmp.lt.s32.totalorder %s227_s12, %s227_s12 }
  0x59   : > { %p2959_p9 = scmp.ne.s32.totalorder %s227_s12, %s2958_s9  ;;  %p2967_p12 = scmp.lt.s32.totalorder %s2958_s9, %s2958_s9 }
  0x5b   : > { %p2961_p2 = pnand %p2959_p9, %p3169_p8  ;;  %p2968_p3 = por %p2967_p12, %p2966_p11 }
  0x5d   : > { %p2962_p10 = pneg %p2961_p2 }
  0x5f   : > { %p2969_p4 = pnand %p2968_p3, %p2962_p10 }
  0x61   : > { %2972 = shalt.err (!%p2969_p4)
}
  0x62   : > { %2828 = dma.hbm_to_vmem [thread:$0]  (!%p3153_p6), %s3577_s4, 2048, %s227_s12, [#allocation18], %s3081_s22, %s3081_s22, %s3082_s23  }
  0x63   : > { %p3586_p13 = scmp.ne.s32.totalorder %s3583_s26, 0 }
  0x64   : > { %p3587_p8 = scmp.eq.s32.totalorder (!%p3586_p13), %s3135_s25, 0 }
  0x65   : > { %245 = sbr.rel (%p3586_p13) target bundleno = 995 (0x3e3), region = 40 }
  0x6c   : > { %3052 = dma.done.wait (%p3587_p8), [#allocation12], 2048   ;;  %p3588_p0 = pmov %p3587_p8 }
  0x6e   : > { %3054 = vsyncadd (%p3588_p0), [#allocation12], 4294965248  ;;  %p3589_p3 = pmov %p3588_p0 }
  0x6f   : > { %p3590_p4 = pmov %p3588_p0 }
  0x70   : > { %3056 = dma.done.wait (%p3589_p3), [#allocation15], 4096  }
  0x71   : > { %3058 = vsyncadd (%p3590_p4), [#allocation15], 4294963200  ;;  %p3591_p1 = pmov %p3588_p0 }
  0x72   : > { %p3592_p6 = pmov %p3588_p0 }
  0x73   : > { %3060 = dma.done.wait (%p3591_p1), [#allocation18], 2048  }
  0x74   : > { %3062 = vsyncadd (%p3592_p6), [#allocation18], 4294965248  ;;  %p3593_p5 = scmp.ne.s32.totalorder %s3135_s25, 0 }
  0x75   : > { %s3083_s26 = smov (!%p3593_p5), [#allocation2]   ;;  %s2973_s22 = scalar_lea.hbm (!%p3593_p5), %s3575_s2, 2048 }
  0x76   : > { %280 = sbr.rel (%p3593_p5) target bundleno = 343 (0x157), region = 60  ;;  %s288_s8 = sshll.u32 (!%p3593_p5), %s3083_s26, 4  ;;  %s289_s8 = int_to_ptr.vmem [resolvable:$true] %s288_s8 }
  0x77   : > { %p2974_p7 = scmp.ne.s32.totalorder (!%p3593_p5), %s3575_s2, %s2973_s22  ;;  %p2977_p9 = scmp.lt.u32.totalorder (!%p3593_p5), %s2973_s22, %s3575_s2 }
  0x79   : > { %p2979_p2 = pnand (!%p3593_p5), %p2977_p9, %p2974_p7 }
  0x7d   : > { %2982 = shalt.err (!%p2979_p2)  }
  0x7e   : > { %s2983_s15 = scalar_lea.vmem %s289_s8, 2048  ;;  %p2988_p11 = scmp.lt.s32.totalorder %s289_s8, %s289_s8 }
  0x7f   : > { %p2984_p10 = scmp.ne.s32.totalorder %s289_s8, %s2983_s15  ;;  %p2989_p12 = scmp.lt.s32.totalorder %s2983_s15, %s2983_s15 }
  0x81   : > { %p2990_p13 = por %p2989_p12, %p2988_p11 }
  0x83   : > { %p2991_p8 = pnand %p2990_p13, %p2984_p10 }
  0x85   : > { %2994 = shalt.err (!%p2991_p8)  }
  0x86   : > { %291 = dma.hbm_to_vmem [thread:$0]  %s3575_s2, 2048, %s289_s8, [#allocation10] }
  0x87   : > { %3063 = dma.done.wait [#allocation10], 2048 }
  0x88   : > { %3064 = vsyncadd [#allocation10], 4294965248  ;;  %v3084_v0 = vmov 0.0   ;;  %v359_v1 = vld [vmem:[#allocation11] sm:$0xff]  ;;  %v360_v2 = vld [vmem:[#allocation11 + $0x8] sm:$0xff] }
  0x89   : > { %423 = vst [vmem:[#allocation6] sm:$0xff] %v3084_v0  ;;  %424 = vst [vmem:[#allocation6 + $0x8] sm:$0xff] %v3084_v0  ;;  %v361_v3 = vld [vmem:[#allocation11 + $0x10] sm:$0xff]  ;;  %v362_v4 = vld [vmem:[#allocation11 + $0x18] sm:$0xff] }
  0x8a   : > { %425 = vst [vmem:[#allocation6 + $0x10] sm:$0xff] %v3084_v0  ;;  %426 = vst [vmem:[#allocation6 + $0x18] sm:$0xff] %v3084_v0  ;;  %v363_v5 = vld [vmem:[#allocation11 + $0x20] sm:$0xff]  ;;  %v364_v6 = vld [vmem:[#allocation11 + $0x28] sm:$0xff] }
  0x8b   : > { %427 = vst [vmem:[#allocation6 + $0x20] sm:$0xff] %v3084_v0  ;;  %428 = vst [vmem:[#allocation6 + $0x28] sm:$0xff] %v3084_v0  ;;  %v365_v7 = vld [vmem:[#allocation11 + $0x30] sm:$0xff]  ;;  %v366_v8 = vld [vmem:[#allocation11 + $0x38] sm:$0xff] }
  0x8c   : > { %429 = vst [vmem:[#allocation6 + $0x30] sm:$0xff] %v3084_v0  ;;  %430 = vst [vmem:[#allocation6 + $0x38] sm:$0xff] %v3084_v0  ;;  %v367_v9 = vld [vmem:[#allocation11 + $0x40] sm:$0xff]  ;;  %v368_v10 = vld [vmem:[#allocation11 + $0x48] sm:$0xff] }
  0x8d   : > { %431 = vst [vmem:[#allocation6 + $0x40] sm:$0xff] %v3084_v0  ;;  %432 = vst [vmem:[#allocation6 + $0x48] sm:$0xff] %v3084_v0  ;;  %v369_v11 = vld [vmem:[#allocation11 + $0x50] sm:$0xff]  ;;  %v370_v12 = vld [vmem:[#allocation11 + $0x58] sm:$0xff] }
  0x8e   : > { %433 = vst [vmem:[#allocation6 + $0x50] sm:$0xff] %v3084_v0  ;;  %434 = vst [vmem:[#allocation6 + $0x58] sm:$0xff] %v3084_v0  ;;  %v371_v13 = vld [vmem:[#allocation11 + $0x60] sm:$0xff]  ;;  %v372_v14 = vld [vmem:[#allocation11 + $0x68] sm:$0xff] }
  0x8f   : > { %435 = vst [vmem:[#allocation6 + $0x60] sm:$0xff] %v3084_v0  ;;  %436 = vst [vmem:[#allocation6 + $0x68] sm:$0xff] %v3084_v0  ;;  %v373_v15 = vld [vmem:[#allocation11 + $0x70] sm:$0xff]  ;;  %v374_v16 = vld [vmem:[#allocation11 + $0x78] sm:$0xff] }
  0x90   : > { %437 = vst [vmem:[#allocation6 + $0x70] sm:$0xff] %v3084_v0  ;;  %438 = vst [vmem:[#allocation6 + $0x78] sm:$0xff] %v3084_v0  ;;  %v391_v17 = vld [vmem:[#allocation14] sm:$0xff]  ;;  %v392_v18 = vld [vmem:[#allocation14 + $0x8] sm:$0xff] }
  0x91   : > { %439 = vst [vmem:[#allocation7] sm:$0xff] %v3084_v0  ;;  %440 = vst [vmem:[#allocation7 + $0x8] sm:$0xff] %v3084_v0  ;;  %v393_v19 = vld [vmem:[#allocation14 + $0x10] sm:$0xff]  ;;  %v394_v20 = vld [vmem:[#allocation14 + $0x18] sm:$0xff] }
  0x92   : > { %441 = vst [vmem:[#allocation7 + $0x10] sm:$0xff] %v3084_v0  ;;  %442 = vst [vmem:[#allocation7 + $0x18] sm:$0xff] %v3084_v0  ;;  %v395_v21 = vld [vmem:[#allocation14 + $0x20] sm:$0xff]  ;;  %v396_v22 = vld [vmem:[#allocation14 + $0x28] sm:$0xff] }
  0x93   : > { %443 = vst [vmem:[#allocation7 + $0x20] sm:$0xff] %v3084_v0  ;;  %444 = vst [vmem:[#allocation7 + $0x28] sm:$0xff] %v3084_v0  ;;  %v397_v23 = vld [vmem:[#allocation14 + $0x30] sm:$0xff]  ;;  %v398_v24 = vld [vmem:[#allocation14 + $0x38] sm:$0xff] }
  0x94   : > { %445 = vst [vmem:[#allocation7 + $0x30] sm:$0xff] %v3084_v0  ;;  %446 = vst [vmem:[#allocation7 + $0x38] sm:$0xff] %v3084_v0  ;;  %v399_v25 = vld [vmem:[#allocation14 + $0x40] sm:$0xff]  ;;  %v400_v26 = vld [vmem:[#allocation14 + $0x48] sm:$0xff] }
  0x95   : > { %447 = vst [vmem:[#allocation7 + $0x40] sm:$0xff] %v3084_v0  ;;  %448 = vst [vmem:[#allocation7 + $0x48] sm:$0xff] %v3084_v0  ;;  %v401_v27 = vld [vmem:[#allocation14 + $0x50] sm:$0xff]  ;;  %v402_v28 = vld [vmem:[#allocation14 + $0x58] sm:$0xff] }
  0x96   : > { %449 = vst [vmem:[#allocation7 + $0x50] sm:$0xff] %v3084_v0  ;;  %450 = vst [vmem:[#allocation7 + $0x58] sm:$0xff] %v3084_v0  ;;  %v403_v29 = vld [vmem:[#allocation14 + $0x60] sm:$0xff]  ;;  %v404_v30 = vld [vmem:[#allocation14 + $0x68] sm:$0xff] }
  0x97   : > { %451 = vst [vmem:[#allocation7 + $0x60] sm:$0xff] %v3084_v0  ;;  %452 = vst [vmem:[#allocation7 + $0x68] sm:$0xff] %v3084_v0  ;;  %v405_v31 = vld [vmem:[#allocation14 + $0x70] sm:$0xff]  ;;  %v406_v32 = vld [vmem:[#allocation14 + $0x78] sm:$0xff] }
  0x98   : > { %453 = vst [vmem:[#allocation7 + $0x70] sm:$0xff] %v3084_v0  ;;  %454 = vst [vmem:[#allocation7 + $0x78] sm:$0xff] %v3084_v0  ;;  %v295_v33 = vld [vmem:[#allocation2] sm:$0xff]  ;;  %v296_v34 = vld [vmem:[#allocation2 + $0x8] sm:$0xff] }
  0x99   : > { %455 = vst [vmem:[#allocation8] sm:$0xff] %v3084_v0  ;;  %456 = vst [vmem:[#allocation8 + $0x8] sm:$0xff] %v3084_v0  ;;  %311 = vxpose.xlu0.b32.start [1/16] %v295_v33, 128  ;;  %v297_v35 = vld [vmem:[#allocation2 + $0x10] sm:$0xff]  ;;  %v298_v36 = vld [vmem:[#allocation2 + $0x18] sm:$0xff] }
  0x9a   : > { %457 = vst [vmem:[#allocation8 + $0x10] sm:$0xff] %v3084_v0  ;;  %458 = vst [vmem:[#allocation8 + $0x18] sm:$0xff] %v3084_v0  ;;  %v299_v37 = vld [vmem:[#allocation2 + $0x20] sm:$0xff]  ;;  %v300_v38 = vld [vmem:[#allocation2 + $0x28] sm:$0xff] }
  0x9b   : > { %459 = vst [vmem:[#allocation8 + $0x20] sm:$0xff] %v3084_v0  ;;  %460 = vst [vmem:[#allocation8 + $0x28] sm:$0xff] %v3084_v0  ;;  %v301_v39 = vld [vmem:[#allocation2 + $0x30] sm:$0xff]  ;;  %v302_v40 = vld [vmem:[#allocation2 + $0x38] sm:$0xff] }
  0x9c   : > { %461 = vst [vmem:[#allocation8 + $0x30] sm:$0xff] %v3084_v0  ;;  %462 = vst [vmem:[#allocation8 + $0x38] sm:$0xff] %v3084_v0  ;;  %v303_v41 = vld [vmem:[#allocation2 + $0x40] sm:$0xff]  ;;  %v304_v42 = vld [vmem:[#allocation2 + $0x48] sm:$0xff] }
  0x9d   : > { %463 = vst [vmem:[#allocation8 + $0x40] sm:$0xff] %v3084_v0  ;;  %464 = vst [vmem:[#allocation8 + $0x48] sm:$0xff] %v3084_v0  ;;  %312 = vxpose.xlu0.b32.cont [2/16] %v296_v34, 128  ;;  %v305_v43 = vld [vmem:[#allocation2 + $0x50] sm:$0xff]  ;;  %v306_v44 = vld [vmem:[#allocation2 + $0x58] sm:$0xff] }
  0x9e   : > { %465 = vst [vmem:[#allocation8 + $0x50] sm:$0xff] %v3084_v0  ;;  %466 = vst [vmem:[#allocation8 + $0x58] sm:$0xff] %v3084_v0  ;;  %v307_v45 = vld [vmem:[#allocation2 + $0x60] sm:$0xff]  ;;  %v308_v46 = vld [vmem:[#allocation2 + $0x68] sm:$0xff] }
  0x9f   : > { %467 = vst [vmem:[#allocation8 + $0x60] sm:$0xff] %v3084_v0  ;;  %468 = vst [vmem:[#allocation8 + $0x68] sm:$0xff] %v3084_v0  ;;  %v309_v47 = vld [vmem:[#allocation2 + $0x70] sm:$0xff]  ;;  %v310_v48 = vld [vmem:[#allocation2 + $0x78] sm:$0xff] }
  0xa0   : > { %469 = vst [vmem:[#allocation8 + $0x70] sm:$0xff] %v3084_v0  ;;  %470 = vst [vmem:[#allocation8 + $0x78] sm:$0xff] %v3084_v0 }
  0xa1   : > { %471 = vst [vmem:[#allocation9] sm:$0xff] %v3084_v0  ;;  %472 = vst [vmem:[#allocation9 + $0x8] sm:$0xff] %v3084_v0  ;;  %313 = vxpose.xlu0.b32.cont [3/16] %v297_v35, 128 }
  0xa2   : > { %473 = vst [vmem:[#allocation9 + $0x10] sm:$0xff] %v3084_v0  ;;  %474 = vst [vmem:[#allocation9 + $0x18] sm:$0xff] %v3084_v0 }
  0xa3   : > { %475 = vst [vmem:[#allocation9 + $0x20] sm:$0xff] %v3084_v0  ;;  %476 = vst [vmem:[#allocation9 + $0x28] sm:$0xff] %v3084_v0 }
  0xa4   : > { %477 = vst [vmem:[#allocation9 + $0x30] sm:$0xff] %v3084_v0  ;;  %478 = vst [vmem:[#allocation9 + $0x38] sm:$0xff] %v3084_v0 }
  0xa5   : > { %479 = vst [vmem:[#allocation9 + $0x40] sm:$0xff] %v3084_v0  ;;  %480 = vst [vmem:[#allocation9 + $0x48] sm:$0xff] %v3084_v0  ;;  %314 = vxpose.xlu0.b32.cont [4/16] %v298_v36, 128 }
  0xa6   : > { %481 = vst [vmem:[#allocation9 + $0x50] sm:$0xff] %v3084_v0  ;;  %482 = vst [vmem:[#allocation9 + $0x58] sm:$0xff] %v3084_v0 }
  0xa7   : > { %483 = vst [vmem:[#allocation9 + $0x60] sm:$0xff] %v3084_v0  ;;  %484 = vst [vmem:[#allocation9 + $0x68] sm:$0xff] %v3084_v0 }
  0xa8   : > { %485 = vst [vmem:[#allocation9 + $0x70] sm:$0xff] %v3084_v0  ;;  %486 = vst [vmem:[#allocation9 + $0x78] sm:$0xff] %v3084_v0 }
  0xa9   : > { %375 = vst [vmem:[#allocation4] sm:$0xff] %v359_v1  ;;  %376 = vst [vmem:[#allocation4 + $0x8] sm:$0xff] %v360_v2  ;;  %315 = vxpose.xlu0.b32.cont [5/16] %v299_v37, 128 }
  0xaa   : > { %377 = vst [vmem:[#allocation4 + $0x10] sm:$0xff] %v361_v3  ;;  %378 = vst [vmem:[#allocation4 + $0x18] sm:$0xff] %v362_v4 }
  0xab   : > { %379 = vst [vmem:[#allocation4 + $0x20] sm:$0xff] %v363_v5  ;;  %380 = vst [vmem:[#allocation4 + $0x28] sm:$0xff] %v364_v6 }
  0xac   : > { %381 = vst [vmem:[#allocation4 + $0x30] sm:$0xff] %v365_v7  ;;  %382 = vst [vmem:[#allocation4 + $0x38] sm:$0xff] %v366_v8 }
  0xad   : > { %383 = vst [vmem:[#allocation4 + $0x40] sm:$0xff] %v367_v9  ;;  %384 = vst [vmem:[#allocation4 + $0x48] sm:$0xff] %v368_v10  ;;  %316 = vxpose.xlu0.b32.cont [6/16] %v300_v38, 128 }
  0xae   : > { %385 = vst [vmem:[#allocation4 + $0x50] sm:$0xff] %v369_v11  ;;  %386 = vst [vmem:[#allocation4 + $0x58] sm:$0xff] %v370_v12 }
  0xaf   : > { %387 = vst [vmem:[#allocation4 + $0x60] sm:$0xff] %v371_v13  ;;  %388 = vst [vmem:[#allocation4 + $0x68] sm:$0xff] %v372_v14 }
  0xb0   : > { %389 = vst [vmem:[#allocation4 + $0x70] sm:$0xff] %v373_v15  ;;  %390 = vst [vmem:[#allocation4 + $0x78] sm:$0xff] %v374_v16 }
  0xb1   : > { %407 = vst [vmem:[#allocation5] sm:$0xff] %v391_v17  ;;  %408 = vst [vmem:[#allocation5 + $0x8] sm:$0xff] %v392_v18  ;;  %317 = vxpose.xlu0.b32.cont [7/16] %v301_v39, 128 }
  0xb2   : > { %409 = vst [vmem:[#allocation5 + $0x10] sm:$0xff] %v393_v19  ;;  %410 = vst [vmem:[#allocation5 + $0x18] sm:$0xff] %v394_v20 }
  0xb3   : > { %411 = vst [vmem:[#allocation5 + $0x20] sm:$0xff] %v395_v21  ;;  %412 = vst [vmem:[#allocation5 + $0x28] sm:$0xff] %v396_v22 }
  0xb4   : > { %413 = vst [vmem:[#allocation5 + $0x30] sm:$0xff] %v397_v23  ;;  %414 = vst [vmem:[#allocation5 + $0x38] sm:$0xff] %v398_v24 }
  0xb5   : > { %415 = vst [vmem:[#allocation5 + $0x40] sm:$0xff] %v399_v25  ;;  %416 = vst [vmem:[#allocation5 + $0x48] sm:$0xff] %v400_v26  ;;  %318 = vxpose.xlu0.b32.cont [8/16] %v302_v40, 128 }
  0xb6   : > { %417 = vst [vmem:[#allocation5 + $0x50] sm:$0xff] %v401_v27  ;;  %418 = vst [vmem:[#allocation5 + $0x58] sm:$0xff] %v402_v28 }
  0xb7   : > { %419 = vst [vmem:[#allocation5 + $0x60] sm:$0xff] %v403_v29  ;;  %420 = vst [vmem:[#allocation5 + $0x68] sm:$0xff] %v404_v30 }
  0xb8   : > { %421 = vst [vmem:[#allocation5 + $0x70] sm:$0xff] %v405_v31  ;;  %422 = vst [vmem:[#allocation5 + $0x78] sm:$0xff] %v406_v32 }
  0xb9   : > { %319 = vxpose.xlu0.b32.cont [9/16] %v303_v41, 128 }
  0xbd   : > { %320 = vxpose.xlu0.b32.cont [10/16] %v304_v42, 128 }
  0xc1   : > { %321 = vxpose.xlu0.b32.cont [11/16] %v305_v43, 128 }
  0xc5   : > { %322 = vxpose.xlu0.b32.cont [12/16] %v306_v44, 128 }
  0xc9   : > { %323 = vxpose.xlu0.b32.cont [13/16] %v307_v45, 128 }
  0xcd   : > { %324 = vxpose.xlu0.b32.cont [14/16] %v308_v46, 128 }
  0xd1   : > { %325 = vxpose.xlu0.b32.cont [15/16] %v309_v47, 128 }
  0xd5   : > { %326 = vxpose.xlu0.b32.end [16/16] %v310_v48, 128 }
 0x119   : > { %v327_v49 = vpop.trf.xlu0 }
 0x11a   : > { %343 = vst [vmem:[#allocation3] sm:$0xff] %v327_v49 }
 0x11d   : > { %v328_v50 = vpop.trf.xlu0 }
 0x11e   : > { %344 = vst [vmem:[#allocation3 + $0x8] sm:$0xff] %v328_v50 }
 0x121   : > { %v329_v51 = vpop.trf.xlu0 }
 0x122   : > { %345 = vst [vmem:[#allocation3 + $0x10] sm:$0xff] %v329_v51 }
 0x125   : > { %v330_v52 = vpop.trf.xlu0 }
 0x126   : > { %346 = vst [vmem:[#allocation3 + $0x18] sm:$0xff] %v330_v52 }
 0x129   : > { %v331_v53 = vpop.trf.xlu0 }
 0x12a   : > { %347 = vst [vmem:[#allocation3 + $0x20] sm:$0xff] %v331_v53 }
 0x12d   : > { %v332_v54 = vpop.trf.xlu0 }
 0x12e   : > { %348 = vst [vmem:[#allocation3 + $0x28] sm:$0xff] %v332_v54 }
 0x131   : > { %v333_v55 = vpop.trf.xlu0 }
 0x132   : > { %349 = vst [vmem:[#allocation3 + $0x30] sm:$0xff] %v333_v55 }
 0x135   : > { %v334_v56 = vpop.trf.xlu0 }
 0x136   : > { %350 = vst [vmem:[#allocation3 + $0x38] sm:$0xff] %v334_v56 }
 0x139   : > { %v335_v57 = vpop.trf.xlu0 }
 0x13a   : > { %351 = vst [vmem:[#allocation3 + $0x40] sm:$0xff] %v335_v57 }
 0x13d   : > { %v336_v58 = vpop.trf.xlu0 }
 0x13e   : > { %352 = vst [vmem:[#allocation3 + $0x48] sm:$0xff] %v336_v58 }
 0x141   : > { %v337_v59 = vpop.trf.xlu0 }
 0x142   : > { %353 = vst [vmem:[#allocation3 + $0x50] sm:$0xff] %v337_v59 }
 0x145   : > { %v338_v60 = vpop.trf.xlu0 }
 0x146   : > { %354 = vst [vmem:[#allocation3 + $0x58] sm:$0xff] %v338_v60 }
 0x149   : > { %v339_v61 = vpop.trf.xlu0 }
 0x14a   : > { %355 = vst [vmem:[#allocation3 + $0x60] sm:$0xff] %v339_v61 }
 0x14d   : > { %v340_v62 = vpop.trf.xlu0 }
 0x14e   : > { %356 = vst [vmem:[#allocation3 + $0x68] sm:$0xff] %v340_v62 }
 0x151   : > { %v341_v63 = vpop.trf.xlu0 }
 0x152   : > { %357 = vst [vmem:[#allocation3 + $0x70] sm:$0xff] %v341_v63 }
 0x155   : > { %v342_v0 = vpop.trf.xlu0 }
 0x156   : > { %358 = vst [vmem:[#allocation3 + $0x78] sm:$0xff] %v342_v0 }
 0x157 PF: > { %v3359_v1 = vld [vmem:[#allocation5] sm:$0xff]  ;;  %v3361_v2 = vld [vmem:[#allocation5 + $0x8] sm:$0xff]  ;;  %v3369_v6 = vld [vmem:[#allocation5 + $0x10] sm:$0xff]  ;;  %p2031_p0 = scmp.ne.s32.totalorder %s3135_s25, 1 }
 0x158   : > { %v3363_v3 = vld [vmem:[#allocation4] sm:$0xff]  ;;  %v2568_v4 = vpack.c.bf16 %v3361_v2, %v3359_v1  ;;  %v3367_v5 = vld [vmem:[#allocation4 + $0x8] sm:$0xff]  ;;  %v3371_v7 = vld [vmem:[#allocation5 + $0x18] sm:$0xff] }
 0x159   : > { %v2600_v8 = vpack.c.bf16 %v3367_v5, %v3363_v3  ;;  %v2572_v9 = vpack.c.bf16 %v3371_v7, %v3369_v6  ;;  %v3377_v10 = vld [vmem:[#allocation4 + $0x10] sm:$0xff]  ;;  %v3379_v11 = vld [vmem:[#allocation4 + $0x18] sm:$0xff]  ;;  %v3381_v12 = vld [vmem:[#allocation5 + $0x20] sm:$0xff] }
 0x15a   : > { %2569 = vmatprep.subr.bf16.mxu0 %v2568_v4  ;;  %v2604_v13 = vpack.c.bf16 %v3379_v11, %v3377_v10  ;;  %v3385_v14 = vld [vmem:[#allocation5 + $0x28] sm:$0xff]  ;;  %v3387_v15 = vld [vmem:[#allocation4 + $0x20] sm:$0xff]  ;;  %v3395_v19 = vld [vmem:[#allocation5 + $0x30] sm:$0xff] }
 0x15b   : > { %v3389_v16 = vld [vmem:[#allocation4 + $0x28] sm:$0xff]  ;;  %2601 = vmatprep.subr.bf16.mxu1 %v2600_v8  ;;  %2571 = vmatpush3.bf16.msra.mxu0 %v2568_v4  ;;  %v2576_v17 = vpack.c.bf16 %v3385_v14, %v3381_v12  ;;  %v3397_v20 = vld [vmem:[#allocation5 + $0x38] sm:$0xff]  ;;  %v3399_v21 = vld [vmem:[#allocation4 + $0x30] sm:$0xff] }
 0x15c   : > { %2603 = vmatpush3.bf16.msra.mxu1 %v2600_v8  ;;  %2573 = vmatprep.subr.bf16.mxu0 %v2572_v9  ;;  %v2608_v18 = vpack.c.bf16 %v3389_v16, %v3387_v15  ;;  %v3401_v22 = vld [vmem:[#allocation4 + $0x38] sm:$0xff]  ;;  %v2580_v23 = vpack.c.bf16 %v3397_v20, %v3395_v19  ;;  %v3407_v25 = vld [vmem:[#allocation5 + $0x40] sm:$0xff]  ;;  %v3409_v26 = vld [vmem:[#allocation5 + $0x48] sm:$0xff] }
 0x15d   : > { %2605 = vmatprep.subr.bf16.mxu1 %v2604_v13  ;;  %v2612_v24 = vpack.c.bf16 %v3401_v22, %v3399_v21  ;;  %v519_v27 = vld [vmem:[#allocation2] sm:$0xff]  ;;  %v3413_v29 = vld [vmem:[#allocation4 + $0x48] sm:$0xff]  ;;  %v2584_v31 = vpack.c.bf16 %v3409_v26, %v3407_v25  ;;  %v3419_v33 = vld [vmem:[#allocation5 + $0x50] sm:$0xff] }
 0x15e   : > { %v3411_v28 = vld [vmem:[#allocation4 + $0x40] sm:$0xff]  ;;  %2264 = vmatprep.mubr.f32.mxu0 %v519_v27  ;;  %v3421_v34 = vld [vmem:[#allocation5 + $0x58] sm:$0xff]  ;;  %v3423_v35 = vld [vmem:[#allocation4 + $0x50] sm:$0xff] }
 0x15f   : > { %2575 = vmatpush3.bf16.msra.mxu0 %v2572_v9  ;;  %v680_v30 = vld [vmem:[#allocation3] sm:$0xff]  ;;  %v2616_v32 = vpack.c.bf16 %v3413_v29, %v3411_v28  ;;  %v3425_v36 = vld [vmem:[#allocation4 + $0x58] sm:$0xff]  ;;  %v2588_v37 = vpack.c.bf16 %v3421_v34, %v3419_v33  ;;  %v3433_v40 = vld [vmem:[#allocation5 + $0x68] sm:$0xff] }
 0x160   : > { %2607 = vmatpush3.bf16.msra.mxu1 %v2604_v13  ;;  %2577 = vmatprep.subr.bf16.mxu0 %v2576_v17  ;;  %v2620_v38 = vpack.c.bf16 %v3425_v36, %v3423_v35  ;;  %v3431_v39 = vld [vmem:[#allocation5 + $0x60] sm:$0xff]  ;;  %v3437_v42 = vld [vmem:[#allocation4 + $0x68] sm:$0xff]  ;;  %v3443_v45 = vld [vmem:[#allocation5 + $0x70] sm:$0xff] }
 0x161   : > { %2609 = vmatprep.subr.bf16.mxu1 %v2608_v18  ;;  %2320 = vmatprep.mubr.f32.mxu1 %v680_v30  ;;  %v3435_v41 = vld [vmem:[#allocation4 + $0x60] sm:$0xff]  ;;  %v2592_v43 = vpack.c.bf16 %v3433_v40, %v3431_v39  ;;  %v3445_v46 = vld [vmem:[#allocation5 + $0x78] sm:$0xff]  ;;  %v3447_v47 = vld [vmem:[#allocation4 + $0x70] sm:$0xff] }
 0x162   : > { %v2624_v44 = vpack.c.bf16 %v3437_v42, %v3435_v41  ;;  %v3449_v48 = vld [vmem:[#allocation4 + $0x78] sm:$0xff]  ;;  %v2596_v49 = vpack.c.bf16 %v3445_v46, %v3443_v45  ;;  %v520_v51 = vld [vmem:[#allocation2 + $0x8] sm:$0xff]  ;;  %v521_v53 = vld [vmem:[#allocation2 + $0x10] sm:$0xff] }
 0x163   : > { %2579 = vmatpush3.bf16.msra.mxu0 %v2576_v17  ;;  %v2628_v50 = vpack.c.bf16 %v3449_v48, %v3447_v47  ;;  %v681_v52 = vld [vmem:[#allocation3 + $0x8] sm:$0xff]  ;;  %v682_v54 = vld [vmem:[#allocation3 + $0x10] sm:$0xff]  ;;  %v522_v55 = vld [vmem:[#allocation2 + $0x18] sm:$0xff] }
 0x164   : > { %2611 = vmatpush3.bf16.msra.mxu1 %v2608_v18  ;;  %2581 = vmatprep.subr.bf16.mxu0 %v2580_v23  ;;  %v683_v56 = vld [vmem:[#allocation3 + $0x18] sm:$0xff]  ;;  %v523_v57 = vld [vmem:[#allocation2 + $0x20] sm:$0xff]  ;;  %v524_v59 = vld [vmem:[#allocation2 + $0x28] sm:$0xff] }
 0x165   : > { %2613 = vmatprep.subr.bf16.mxu1 %v2612_v24  ;;  %v684_v58 = vld [vmem:[#allocation3 + $0x20] sm:$0xff]  ;;  %v685_v60 = vld [vmem:[#allocation3 + $0x28] sm:$0xff]  ;;  %v525_v61 = vld [vmem:[#allocation2 + $0x30] sm:$0xff] }
 0x166   : > { %v686_v62 = vld [vmem:[#allocation3 + $0x30] sm:$0xff]  ;;  %v526_v63 = vld [vmem:[#allocation2 + $0x38] sm:$0xff]  ;;  %v527_v4 = vld [vmem:[#allocation2 + $0x40] sm:$0xff] }
 0x167   : > { %2583 = vmatpush3.bf16.msra.mxu0 %v2580_v23  ;;  %v687_v0 = vld [vmem:[#allocation3 + $0x38] sm:$0xff]  ;;  %v688_v8 = vld [vmem:[#allocation3 + $0x40] sm:$0xff]  ;;  %v528_v9 = vld [vmem:[#allocation2 + $0x48] sm:$0xff] }
 0x168   : > { %2615 = vmatpush3.bf16.msra.mxu1 %v2612_v24  ;;  %2585 = vmatprep.subr.bf16.mxu0 %v2584_v31  ;;  %v689_v13 = vld [vmem:[#allocation3 + $0x48] sm:$0xff]  ;;  %v529_v17 = vld [vmem:[#allocation2 + $0x50] sm:$0xff]  ;;  %v530_v23 = vld [vmem:[#allocation2 + $0x58] sm:$0xff] }
 0x169   : > { %2617 = vmatprep.subr.bf16.mxu1 %v2616_v32  ;;  %v690_v18 = vld [vmem:[#allocation3 + $0x50] sm:$0xff]  ;;  %v691_v24 = vld [vmem:[#allocation3 + $0x58] sm:$0xff]  ;;  %v531_v27 = vld [vmem:[#allocation2 + $0x60] sm:$0xff] }
 0x16a   : > { %v692_v30 = vld [vmem:[#allocation3 + $0x60] sm:$0xff] }
 0x16b   : > { %2587 = vmatpush3.bf16.msra.mxu0 %v2584_v31  ;;  %v532_v31 = vld [vmem:[#allocation2 + $0x68] sm:$0xff] }
 0x16c   : > { %2619 = vmatpush3.bf16.msra.mxu1 %v2616_v32  ;;  %2589 = vmatprep.subr.bf16.mxu0 %v2588_v37  ;;  %v693_v32 = vld [vmem:[#allocation3 + $0x68] sm:$0xff] }
 0x16d   : > { %2621 = vmatprep.subr.bf16.mxu1 %v2620_v38 }
 0x16f   : > { %2591 = vmatpush3.bf16.msra.mxu0 %v2588_v37  ;;  %v533_v37 = vld [vmem:[#allocation2 + $0x70] sm:$0xff] }
 0x170   : > { %2623 = vmatpush3.bf16.msra.mxu1 %v2620_v38  ;;  %2593 = vmatprep.subr.bf16.mxu0 %v2592_v43  ;;  %v694_v38 = vld [vmem:[#allocation3 + $0x70] sm:$0xff] }
 0x171   : > { %2625 = vmatprep.subr.bf16.mxu1 %v2624_v44 }
 0x173   : > { %2595 = vmatpush3.bf16.msra.mxu0 %v2592_v43  ;;  %v534_v43 = vld [vmem:[#allocation2 + $0x78] sm:$0xff] }
 0x174   : > { %2627 = vmatpush3.bf16.msra.mxu1 %v2624_v44  ;;  %2597 = vmatprep.subr.bf16.mxu0 %v2596_v49  ;;  %v695_v44 = vld [vmem:[#allocation3 + $0x78] sm:$0xff] }
 0x175   : > { %2629 = vmatprep.subr.bf16.mxu1 %v2628_v50 }
 0x177   : > { %2599 = vmatpush3.bf16.msra.mxu0 %v2596_v49  ;;  %v874_v49 = vld [vmem:[#allocation6 + $0x8] sm:$0xff] }
 0x178   : > { %2631 = vmatpush3.bf16.msra.mxu1 %v2628_v50  ;;  %v970_v50 = vld [vmem:[#allocation8 + $0x8] sm:$0xff] }
 0x17a   : > { %2265 = vmatmul.mubr.f32.vlgmr.msra.gmra.mrb[0].mxu0 %v520_v51  ;;  %v873_v51 = vld [vmem:[#allocation6] sm:$0xff] }
 0x17b   : > { %2321 = vmatmul.mubr.f32.vlgmr.msra.gmra.mrb[0].mxu1 %v681_v52  ;;  %2267 = vmatprep.mubr.f32.mxu0 %v521_v53  ;;  %v922_v53 = vld [vmem:[#allocation7 + $0x8] sm:$0xff] }
 0x17c   : > { %2323 = vmatprep.mubr.f32.mxu1 %v682_v54  ;;  %v969_v54 = vld [vmem:[#allocation8] sm:$0xff] }
 0x17e   : > { %2268 = vmatmul.mubr.f32.gmra.mrb[2].mxu0 %v522_v55 }
 0x17f   : > { %2324 = vmatmul.mubr.f32.gmra.mrb[2].mxu1 %v683_v56  ;;  %2270 = vmatprep.mubr.f32.mxu0 %v523_v57 }
 0x180   : > { %2326 = vmatprep.mubr.f32.mxu1 %v684_v58  ;;  %v1018_v58 = vld [vmem:[#allocation9 + $0x8] sm:$0xff] }
 0x182   : > { %2271 = vmatmul.mubr.f32.gmra.mrb[4].mxu0 %v524_v59 }
 0x183   : > { %2327 = vmatmul.mubr.f32.gmra.mrb[4].mxu1 %v685_v60  ;;  %2273 = vmatprep.mubr.f32.mxu0 %v525_v61  ;;  %v921_v60 = vld [vmem:[#allocation7] sm:$0xff] }
 0x184   : > { %2329 = vmatprep.mubr.f32.mxu1 %v686_v62 }
 0x186   : > { %2274 = vmatmul.mubr.f32.gmra.mrb[6].mxu0 %v526_v63 }
 0x187   : > { %2330 = vmatmul.mubr.f32.gmra.mrb[6].mxu1 %v687_v0  ;;  %2276 = vmatprep.mubr.f32.mxu0 %v527_v4 }
 0x188   : > { %2332 = vmatprep.mubr.f32.mxu1 %v688_v8  ;;  %v1017_v8 = vld [vmem:[#allocation9] sm:$0xff] }
 0x18a   : > { %2277 = vmatmul.mubr.f32.gmra.mrb[8].mxu0 %v528_v9  ;;  %v876_v9 = vld [vmem:[#allocation6 + $0x18] sm:$0xff] }
 0x18b   : > { %2333 = vmatmul.mubr.f32.gmra.mrb[8].mxu1 %v689_v13  ;;  %2279 = vmatprep.mubr.f32.mxu0 %v529_v17 }
 0x18c   : > { %2335 = vmatprep.mubr.f32.mxu1 %v690_v18 }
 0x18e   : > { %2280 = vmatmul.mubr.f32.gmra.mrb[10].mxu0 %v530_v23  ;;  %v972_v23 = vld [vmem:[#allocation8 + $0x18] sm:$0xff] }
 0x18f   : > { %2336 = vmatmul.mubr.f32.gmra.mrb[10].mxu1 %v691_v24  ;;  %2282 = vmatprep.mubr.f32.mxu0 %v531_v27  ;;  %v875_v24 = vld [vmem:[#allocation6 + $0x10] sm:$0xff] }
 0x190   : > { %2338 = vmatprep.mubr.f32.mxu1 %v692_v30 }
 0x192   : > { %2283 = vmatmul.mubr.f32.gmra.mrb[12].mxu0 %v532_v31 }
 0x193   : > { %2339 = vmatmul.mubr.f32.gmra.mrb[12].mxu1 %v693_v32  ;;  %2285 = vmatprep.mubr.f32.mxu0 %v533_v37  ;;  %v971_v37 = vld [vmem:[#allocation8 + $0x10] sm:$0xff] }
 0x194   : > { %2341 = vmatprep.mubr.f32.mxu1 %v694_v38 }
 0x196   : > { %2286 = vmatmul.mubr.f32.gmra.mrb[14].mxu0 %v534_v43 }
 0x197   : > { %2342 = vmatmul.mubr.f32.gmra.mrb[14].mxu1 %v695_v44 }
 0x24d   : > { %v2266_v52 = vpop.f32.mrb[0].mxu0 }
 0x24e   : > { %v842_v55 = vmul.f32 %v2266_v52, %v3367_v5  ;;  %v890_v56 = vadd.f32 %v2266_v52, %v874_v49  ;;  %v2322_v57 = vpop.f32.mrb[0].mxu1  ;;  %v601_v59 = vpop.f32.mrb[1].mxu0 }
 0x24f   : > { %v858_v61 = vmul.f32 %v2322_v57, %v3361_v2  ;;  %v986_v62 = vadd.f32 %v2322_v57, %v970_v50  ;;  %v841_v63 = vmul.f32 %v601_v59, %v3363_v3  ;;  %v889_v0 = vadd.f32 %v873_v51, %v601_v59  ;;  %v762_v4 = vpop.f32.mrb[1].mxu1  ;;  %v924_v3 = vld [vmem:[#allocation7 + $0x18] sm:$0xff] }
 0x250   : > { %906 = vst [vmem:[#allocation6 + $0x8] sm:$0xff] %v890_v56  ;;  %v938_v13 = vadd.f32 %v922_v53, %v842_v55  ;;  %v1066_v17 = vadd.f32 %v2266_v52, %v842_v55  ;;  %v857_v18 = vmul.f32 %v762_v4, %v3359_v1  ;;  %v985_v5 = vadd.f32 %v969_v54, %v762_v4  ;;  %v1020_v50 = vld [vmem:[#allocation9 + $0x18] sm:$0xff]  ;;  %v923_v52 = vld [vmem:[#allocation7 + $0x10] sm:$0xff] }
 0x251   : > { %1002 = vst [vmem:[#allocation8 + $0x8] sm:$0xff] %v986_v62  ;;  %v1034_v27 = vadd.f32 %v1018_v58, %v858_v61  ;;  %v1098_v30 = vadd.f32 %v2322_v57, %v858_v61  ;;  %905 = vst [vmem:[#allocation6] sm:$0xff] %v889_v0  ;;  %v937_v2 = vadd.f32 %v921_v60, %v841_v63  ;;  %v2269_v32 = vpop.f32.mrb[2].mxu0  ;;  %v1019_v58 = vld [vmem:[#allocation9 + $0x10] sm:$0xff]  ;;  %v877_v0 = vld [vmem:[#allocation6 + $0x20] sm:$0xff] }
 0x252   : > { %v1065_v31 = vadd.f32 %v841_v63, %v601_v59  ;;  %954 = vst [vmem:[#allocation7 + $0x8] sm:$0xff] %v938_v13  ;;  %1082 = vst [vmem:[#allocation4 + $0x8] sm:$0xff] %v1066_v17  ;;  %v1033_v38 = vadd.f32 %v1017_v8, %v857_v18  ;;  %v1097_v43 = vadd.f32 %v857_v18, %v762_v4  ;;  %v2325_v49 = vpop.f32.mrb[2].mxu1  ;;  %v611_v51 = vpop.f32.mrb[3].mxu0  ;;  %v878_v59 = vld [vmem:[#allocation6 + $0x28] sm:$0xff]  ;;  %v973_v17 = vld [vmem:[#allocation8 + $0x20] sm:$0xff] }
 0x253   : > { %1001 = vst [vmem:[#allocation8] sm:$0xff] %v985_v5  ;;  %v844_v44 = vmul.f32 %v2269_v32, %v3379_v11  ;;  %v892_v1 = vadd.f32 %v2269_v32, %v876_v9  ;;  %1050 = vst [vmem:[#allocation9 + $0x8] sm:$0xff] %v1034_v27  ;;  %v860_v53 = vmul.f32 %v2325_v49, %v3371_v7  ;;  %v772_v57 = vpop.f32.mrb[3].mxu1  ;;  %v974_v63 = vld [vmem:[#allocation8 + $0x28] sm:$0xff] }
 0x254   : > { %1114 = vst [vmem:[#allocation5 + $0x8] sm:$0xff] %v1098_v30  ;;  %953 = vst [vmem:[#allocation7] sm:$0xff] %v937_v2  ;;  %v988_v54 = vadd.f32 %v2325_v49, %v972_v23  ;;  %v843_v55 = vmul.f32 %v611_v51, %v3377_v10  ;;  %v891_v56 = vadd.f32 %v875_v24, %v611_v51  ;;  %v926_v13 = vld [vmem:[#allocation7 + $0x28] sm:$0xff]  ;;  %v925_v2 = vld [vmem:[#allocation7 + $0x20] sm:$0xff] }
 0x255   : > { %1081 = vst [vmem:[#allocation4] sm:$0xff] %v1065_v31  ;;  %1049 = vst [vmem:[#allocation9] sm:$0xff] %v1033_v38  ;;  %v940_v11 = vadd.f32 %v924_v3, %v844_v44  ;;  %v1068_v60 = vadd.f32 %v2269_v32, %v844_v44  ;;  %v859_v61 = vmul.f32 %v772_v57, %v3369_v6  ;;  %v2272_v9 = vpop.f32.mrb[4].mxu0  ;;  %v1022_v27 = vld [vmem:[#allocation9 + $0x28] sm:$0xff]  ;;  %v880_v44 = vld [vmem:[#allocation6 + $0x38] sm:$0xff] }
 0x256   : > { %1113 = vst [vmem:[#allocation5] sm:$0xff] %v1097_v43  ;;  %908 = vst [vmem:[#allocation6 + $0x18] sm:$0xff] %v892_v1  ;;  %v987_v62 = vadd.f32 %v971_v37, %v772_v57  ;;  %v1036_v4 = vadd.f32 %v1020_v50, %v860_v53  ;;  %v1100_v7 = vadd.f32 %v2325_v49, %v860_v53  ;;  %v2328_v24 = vpop.f32.mrb[4].mxu1  ;;  %v621_v30 = vpop.f32.mrb[5].mxu0  ;;  %v1021_v43 = vld [vmem:[#allocation9 + $0x20] sm:$0xff] }
 0x257   : > { %1004 = vst [vmem:[#allocation8 + $0x18] sm:$0xff] %v988_v54  ;;  %907 = vst [vmem:[#allocation6 + $0x10] sm:$0xff] %v891_v56  ;;  %v939_v8 = vadd.f32 %v923_v52, %v843_v55  ;;  %v1067_v10 = vadd.f32 %v843_v55, %v611_v51  ;;  %v1035_v18 = vadd.f32 %v1019_v58, %v859_v61  ;;  %v782_v38 = vpop.f32.mrb[5].mxu1  ;;  %v976_v51 = vld [vmem:[#allocation8 + $0x38] sm:$0xff]  ;;  %v879_v52 = vld [vmem:[#allocation6 + $0x30] sm:$0xff] }
 0x258   : > { %956 = vst [vmem:[#allocation7 + $0x18] sm:$0xff] %v940_v11  ;;  %1084 = vst [vmem:[#allocation4 + $0x18] sm:$0xff] %v1068_v60  ;;  %v1099_v5 = vadd.f32 %v859_v61, %v772_v57  ;;  %v846_v23 = vmul.f32 %v2272_v9, %v3389_v16  ;;  %v894_v6 = vadd.f32 %v2272_v9, %v878_v59  ;;  %v928_v56 = vld [vmem:[#allocation7 + $0x38] sm:$0xff]  ;;  %v975_v57 = vld [vmem:[#allocation8 + $0x30] sm:$0xff] }
 0x259   : > { %1003 = vst [vmem:[#allocation8 + $0x10] sm:$0xff] %v987_v62  ;;  %1052 = vst [vmem:[#allocation9 + $0x18] sm:$0xff] %v1036_v4  ;;  %v862_v31 = vmul.f32 %v2328_v24, %v3385_v14  ;;  %v990_v32 = vadd.f32 %v2328_v24, %v974_v63  ;;  %v845_v3 = vmul.f32 %v621_v30, %v3387_v15  ;;  %v2275_v55 = vpop.f32.mrb[6].mxu0  ;;  %v1024_v61 = vld [vmem:[#allocation9 + $0x38] sm:$0xff]  ;;  %v927_v63 = vld [vmem:[#allocation7 + $0x30] sm:$0xff] }
 0x25a   : > { %1116 = vst [vmem:[#allocation5 + $0x18] sm:$0xff] %v1100_v7  ;;  %955 = vst [vmem:[#allocation7 + $0x10] sm:$0xff] %v939_v8  ;;  %v893_v37 = vadd.f32 %v877_v0, %v621_v30  ;;  %v942_v16 = vadd.f32 %v926_v13, %v846_v23  ;;  %v1070_v1 = vadd.f32 %v2272_v9, %v846_v23  ;;  %v2331_v60 = vpop.f32.mrb[6].mxu1  ;;  %v631_v62 = vpop.f32.mrb[7].mxu0  ;;  %v1023_v9 = vld [vmem:[#allocation9 + $0x30] sm:$0xff]  ;;  %v882_v13 = vld [vmem:[#allocation6 + $0x48] sm:$0xff] }
 0x25b   : > { %1083 = vst [vmem:[#allocation4 + $0x10] sm:$0xff] %v1067_v10  ;;  %1051 = vst [vmem:[#allocation9 + $0x10] sm:$0xff] %v1035_v18  ;;  %v861_v49 = vmul.f32 %v782_v38, %v3381_v12  ;;  %v989_v50 = vadd.f32 %v973_v17, %v782_v38  ;;  %v1038_v53 = vadd.f32 %v1022_v27, %v862_v31  ;;  %v792_v10 = vpop.f32.mrb[7].mxu1  ;;  %v978_v23 = vld [vmem:[#allocation8 + $0x48] sm:$0xff] }
 0x25c   : > { %1115 = vst [vmem:[#allocation5 + $0x10] sm:$0xff] %v1099_v5  ;;  %910 = vst [vmem:[#allocation6 + $0x28] sm:$0xff] %v894_v6  ;;  %v1102_v14 = vadd.f32 %v2328_v24, %v862_v31  ;;  %v941_v54 = vadd.f32 %v925_v2, %v845_v3  ;;  %v1069_v15 = vadd.f32 %v845_v3, %v621_v30  ;;  %v881_v6 = vld [vmem:[#allocation6 + $0x40] sm:$0xff]  ;;  %v930_v2 = vld [vmem:[#allocation7 + $0x48] sm:$0xff] }
 0x25d   : > { %1006 = vst [vmem:[#allocation8 + $0x28] sm:$0xff] %v990_v32  ;;  %909 = vst [vmem:[#allocation6 + $0x20] sm:$0xff] %v893_v37  ;;  %v1037_v58 = vadd.f32 %v1021_v43, %v861_v49  ;;  %v1101_v59 = vadd.f32 %v861_v49, %v782_v38  ;;  %v848_v11 = vmul.f32 %v2275_v55, %v3401_v22  ;;  %v2278_v30 = vpop.f32.mrb[8].mxu0  ;;  %v977_v31 = vld [vmem:[#allocation8 + $0x40] sm:$0xff]  ;;  %v1026_v43 = vld [vmem:[#allocation9 + $0x48] sm:$0xff] }
 0x25e   : > { %958 = vst [vmem:[#allocation7 + $0x28] sm:$0xff] %v942_v16  ;;  %1086 = vst [vmem:[#allocation4 + $0x28] sm:$0xff] %v1070_v1  ;;  %v896_v12 = vadd.f32 %v2275_v55, %v880_v44  ;;  %v864_v0 = vmul.f32 %v2331_v60, %v3397_v20  ;;  %v992_v4 = vadd.f32 %v2331_v60, %v976_v51  ;;  %v2334_v38 = vpop.f32.mrb[8].mxu1  ;;  %v641_v44 = vpop.f32.mrb[9].mxu0  ;;  %v929_v16 = vld [vmem:[#allocation7 + $0x40] sm:$0xff] }
 0x25f   : > { %1005 = vst [vmem:[#allocation8 + $0x20] sm:$0xff] %v989_v50  ;;  %1054 = vst [vmem:[#allocation9 + $0x28] sm:$0xff] %v1038_v53  ;;  %v847_v7 = vmul.f32 %v631_v62, %v3399_v21  ;;  %v895_v8 = vadd.f32 %v879_v52, %v631_v62  ;;  %v944_v22 = vadd.f32 %v928_v56, %v848_v11  ;;  %v802_v52 = vpop.f32.mrb[9].mxu1  ;;  %v1025_v53 = vld [vmem:[#allocation9 + $0x40] sm:$0xff]  ;;  %v980_v56 = vld [vmem:[#allocation8 + $0x58] sm:$0xff] }
 0x260   : > { %1118 = vst [vmem:[#allocation5 + $0x28] sm:$0xff] %v1102_v14  ;;  %957 = vst [vmem:[#allocation7 + $0x20] sm:$0xff] %v941_v54  ;;  %v1072_v17 = vadd.f32 %v2275_v55, %v848_v11  ;;  %v863_v18 = vmul.f32 %v792_v10, %v3395_v19  ;;  %v991_v5 = vadd.f32 %v975_v57, %v792_v10  ;;  %v884_v14 = vld [vmem:[#allocation6 + $0x58] sm:$0xff]  ;;  %v883_v57 = vld [vmem:[#allocation6 + $0x50] sm:$0xff] }
 0x261   : > { %1085 = vst [vmem:[#allocation4 + $0x20] sm:$0xff] %v1069_v15  ;;  %1053 = vst [vmem:[#allocation9 + $0x20] sm:$0xff] %v1037_v58  ;;  %v1040_v24 = vadd.f32 %v1024_v61, %v864_v0  ;;  %v1104_v20 = vadd.f32 %v2331_v60, %v864_v0  ;;  %v943_v27 = vadd.f32 %v927_v63, %v847_v7  ;;  %v2281_v11 = vpop.f32.mrb[10].mxu0  ;;  %v979_v60 = vld [vmem:[#allocation8 + $0x50] sm:$0xff] }
 0x262   : > { %1117 = vst [vmem:[#allocation5 + $0x20] sm:$0xff] %v1101_v59  ;;  %912 = vst [vmem:[#allocation6 + $0x38] sm:$0xff] %v896_v12  ;;  %v1071_v21 = vadd.f32 %v847_v7, %v631_v62  ;;  %v1039_v32 = vadd.f32 %v1023_v9, %v863_v18  ;;  %v1103_v3 = vadd.f32 %v863_v18, %v792_v10  ;;  %v932_v12 = vld [vmem:[#allocation7 + $0x58] sm:$0xff]  ;;  %v2337_v0 = vpop.f32.mrb[10].mxu1  ;;  %v651_v7 = vpop.f32.mrb[11].mxu0  ;;  %v1027_v18 = vld [vmem:[#allocation9 + $0x50] sm:$0xff] }
 0x263   : > { %1008 = vst [vmem:[#allocation8 + $0x38] sm:$0xff] %v992_v4  ;;  %911 = vst [vmem:[#allocation6 + $0x30] sm:$0xff] %v895_v8  ;;  %v850_v37 = vmul.f32 %v2278_v30, %v3413_v29  ;;  %v898_v19 = vadd.f32 %v2278_v30, %v882_v13  ;;  %v866_v1 = vmul.f32 %v2334_v38, %v3409_v26  ;;  %v1028_v4 = vld [vmem:[#allocation9 + $0x58] sm:$0xff]  ;;  %v931_v8 = vld [vmem:[#allocation7 + $0x50] sm:$0xff] }
 0x264   : > { %960 = vst [vmem:[#allocation7 + $0x38] sm:$0xff] %v944_v22  ;;  %1088 = vst [vmem:[#allocation4 + $0x38] sm:$0xff] %v1072_v17  ;;  %v994_v49 = vadd.f32 %v2334_v38, %v978_v23  ;;  %v849_v50 = vmul.f32 %v641_v44, %v3411_v28  ;;  %v897_v51 = vadd.f32 %v881_v6, %v641_v44  ;;  %v812_v17 = vpop.f32.mrb[11].mxu1 }
 0x265   : > { %1007 = vst [vmem:[#allocation8 + $0x30] sm:$0xff] %v991_v5  ;;  %1056 = vst [vmem:[#allocation9 + $0x38] sm:$0xff] %v1040_v24  ;;  %v946_v29 = vadd.f32 %v930_v2, %v850_v37  ;;  %v1074_v54 = vadd.f32 %v2278_v30, %v850_v37  ;;  %v865_v15 = vmul.f32 %v802_v52, %v3407_v25  ;;  %v886_v5 = vld [vmem:[#allocation6 + $0x68] sm:$0xff]  ;;  %v2284_v2 = vpop.f32.mrb[12].mxu0 }
 0x266   : > { %1120 = vst [vmem:[#allocation5 + $0x38] sm:$0xff] %v1104_v20  ;;  %959 = vst [vmem:[#allocation7 + $0x30] sm:$0xff] %v943_v27  ;;  %v993_v55 = vadd.f32 %v977_v31, %v802_v52  ;;  %v1042_v58 = vadd.f32 %v1026_v43, %v866_v1  ;;  %v1106_v26 = vadd.f32 %v2334_v38, %v866_v1  ;;  %v982_v20 = vld [vmem:[#allocation8 + $0x68] sm:$0xff]  ;;  %v885_v27 = vld [vmem:[#allocation6 + $0x60] sm:$0xff]  ;;  %v2340_v38 = vpop.f32.mrb[12].mxu1 }
 0x267   : > { %1087 = vst [vmem:[#allocation4 + $0x30] sm:$0xff] %v1071_v21  ;;  %1055 = vst [vmem:[#allocation9 + $0x30] sm:$0xff] %v1039_v32  ;;  %v945_v59 = vadd.f32 %v929_v16, %v849_v50  ;;  %v1073_v28 = vadd.f32 %v849_v50, %v641_v44  ;;  %v1041_v61 = vadd.f32 %v1025_v53, %v865_v15  ;;  %v934_v31 = vld [vmem:[#allocation7 + $0x68] sm:$0xff]  ;;  %v981_v32 = vld [vmem:[#allocation8 + $0x60] sm:$0xff]  ;;  %v661_v44 = vpop.f32.mrb[13].mxu0 }
 0x268   : > { %1119 = vst [vmem:[#allocation5 + $0x30] sm:$0xff] %v1103_v3  ;;  %914 = vst [vmem:[#allocation6 + $0x48] sm:$0xff] %v898_v19  ;;  %v1105_v62 = vadd.f32 %v865_v15, %v802_v52  ;;  %v852_v63 = vmul.f32 %v2281_v11, %v3425_v36  ;;  %v900_v25 = vadd.f32 %v2281_v11, %v884_v14  ;;  %v1030_v43 = vld [vmem:[#allocation9 + $0x68] sm:$0xff]  ;;  %v933_v16 = vld [vmem:[#allocation7 + $0x60] sm:$0xff]  ;;  %v822_v52 = vpop.f32.mrb[13].mxu1 }
 0x269   : > { %1010 = vst [vmem:[#allocation8 + $0x48] sm:$0xff] %v994_v49  ;;  %913 = vst [vmem:[#allocation6 + $0x40] sm:$0xff] %v897_v51  ;;  %v868_v10 = vmul.f32 %v2337_v0, %v3421_v34  ;;  %v996_v9 = vadd.f32 %v2337_v0, %v980_v56  ;;  %v851_v13 = vmul.f32 %v651_v7, %v3423_v35  ;;  %v1029_v53 = vld [vmem:[#allocation9 + $0x60] sm:$0xff]  ;;  %v888_v14 = vld [vmem:[#allocation6 + $0x78] sm:$0xff] }
 0x26a   : > { %962 = vst [vmem:[#allocation7 + $0x48] sm:$0xff] %v946_v29  ;;  %1090 = vst [vmem:[#allocation4 + $0x48] sm:$0xff] %v1074_v54  ;;  %v899_v22 = vadd.f32 %v883_v57, %v651_v7  ;;  %v948_v36 = vadd.f32 %v932_v12, %v852_v63  ;;  %v1076_v23 = vadd.f32 %v2281_v11, %v852_v63  ;;  %v887_v56 = vld [vmem:[#allocation6 + $0x70] sm:$0xff] }
 0x26b   : > { %1009 = vst [vmem:[#allocation8 + $0x40] sm:$0xff] %v993_v55  ;;  %1058 = vst [vmem:[#allocation9 + $0x48] sm:$0xff] %v1042_v58  ;;  %v867_v6 = vmul.f32 %v812_v17, %v3419_v33  ;;  %v995_v24 = vadd.f32 %v979_v60, %v812_v17  ;;  %v1044_v21 = vadd.f32 %v1028_v4, %v868_v10  ;;  %v984_v55 = vld [vmem:[#allocation8 + $0x78] sm:$0xff] }
 0x26c   : > { %1122 = vst [vmem:[#allocation5 + $0x48] sm:$0xff] %v1106_v26  ;;  %961 = vst [vmem:[#allocation7 + $0x40] sm:$0xff] %v945_v59  ;;  %v1108_v34 = vadd.f32 %v2337_v0, %v868_v10  ;;  %v947_v30 = vadd.f32 %v931_v8, %v851_v13  ;;  %v1075_v35 = vadd.f32 %v851_v13, %v651_v7  ;;  %v2287_v26 = vpop.f32.mrb[14].mxu0  ;;  %v936_v59 = vld [vmem:[#allocation7 + $0x78] sm:$0xff] }
 0x26d   : > { %1089 = vst [vmem:[#allocation4 + $0x40] sm:$0xff] %v1073_v28  ;;  %1057 = vst [vmem:[#allocation9 + $0x40] sm:$0xff] %v1041_v61  ;;  %v1043_v3 = vadd.f32 %v1027_v18, %v867_v6  ;;  %v1107_v37 = vadd.f32 %v867_v6, %v812_v17  ;;  %v854_v19 = vmul.f32 %v2284_v2, %v3437_v42  ;;  %v983_v28 = vld [vmem:[#allocation8 + $0x70] sm:$0xff]  ;;  %v2343_v61 = vpop.f32.mrb[14].mxu1  ;;  %v671_v63 = vpop.f32.mrb[15].mxu0  ;;  %v1183_v6 = vld [vmem:[#allocation17 + $0x8] sm:$0xff] (!%p2031_p0) }
 0x26e   : > { %1121 = vst [vmem:[#allocation5 + $0x40] sm:$0xff] %v1105_v62  ;;  %916 = vst [vmem:[#allocation6 + $0x58] sm:$0xff] %v900_v25  ;;  %v902_v33 = vadd.f32 %v2284_v2, %v886_v5  ;;  %v870_v1 = vmul.f32 %v2340_v38, %v3433_v40  ;;  %v998_v49 = vadd.f32 %v2340_v38, %v982_v20  ;;  %v1032_v62 = vld [vmem:[#allocation9 + $0x78] sm:$0xff]  ;;  %v935_v25 = vld [vmem:[#allocation7 + $0x70] sm:$0xff]  ;;  %v832_v10 = vpop.f32.mrb[15].mxu1 }
 0x26f   : > { %1012 = vst [vmem:[#allocation8 + $0x58] sm:$0xff] %v996_v9  ;;  %915 = vst [vmem:[#allocation6 + $0x50] sm:$0xff] %v899_v22  ;;  %v853_v50 = vmul.f32 %v661_v44, %v3435_v41  ;;  %v901_v51 = vadd.f32 %v885_v27, %v661_v44  ;;  %v950_v42 = vadd.f32 %v934_v31, %v854_v19  ;;  %v1031_v9 = vld [vmem:[#allocation9 + $0x70] sm:$0xff]  ;;  %v1185_v27 = vld [vmem:[#allocation17 + $0x18] sm:$0xff] (!%p2031_p0) }
 0x270   : > { %964 = vst [vmem:[#allocation7 + $0x58] sm:$0xff] %v948_v36  ;;  %1092 = vst [vmem:[#allocation4 + $0x58] sm:$0xff] %v1076_v23  ;;  %v1078_v29 = vadd.f32 %v2284_v2, %v854_v19  ;;  %v869_v54 = vmul.f32 %v822_v52, %v3431_v39  ;;  %v997_v15 = vadd.f32 %v981_v32, %v822_v52  ;;  %v1166_v2 = vld [vmem:[#allocation7] sm:$0xff] (!%p2031_p0)  ;;  %v1188_v32 = vld [vmem:[#allocation17 + $0x30] sm:$0xff] (!%p2031_p0) }
 0x271   : > { %1011 = vst [vmem:[#allocation8 + $0x50] sm:$0xff] %v995_v24  ;;  %1060 = vst [vmem:[#allocation9 + $0x58] sm:$0xff] %v1044_v21  ;;  %v1046_v57 = vadd.f32 %v1030_v43, %v870_v1  ;;  %v1110_v40 = vadd.f32 %v2340_v38, %v870_v1  ;;  %v949_v58 = vadd.f32 %v933_v16, %v853_v50  ;;  %v1184_v24 = vld [vmem:[#allocation17 + $0x10] sm:$0xff] (!%p2031_p0)  ;;  %v1526_v31 = vld [vmem:[#allocation9] sm:$0xff] (!%p2031_p0)  ;;  %2376 = vmatprep.mubr.f32.mxu0 (!%p2031_p0), %v1166_v2 }
 0x272   : > { %1124 = vst [vmem:[#allocation5 + $0x58] sm:$0xff] %v1108_v34  ;;  %963 = vst [vmem:[#allocation7 + $0x50] sm:$0xff] %v947_v30  ;;  %v1077_v41 = vadd.f32 %v853_v50, %v661_v44  ;;  %v1045_v11 = vadd.f32 %v1029_v53, %v869_v54  ;;  %v1109_v12 = vadd.f32 %v869_v54, %v822_v52  ;;  %v1186_v34 = vld [vmem:[#allocation17 + $0x20] sm:$0xff] (!%p2031_p0)  ;;  %v1187_v30 = vld [vmem:[#allocation17 + $0x28] sm:$0xff] (!%p2031_p0)  ;;  %2488 = vmatprep.mubr.f32.mxu1 (!%p2031_p0), %v1526_v31 }
 0x273   : > { %1091 = vst [vmem:[#allocation4 + $0x50] sm:$0xff] %v1075_v35  ;;  %1059 = vst [vmem:[#allocation9 + $0x50] sm:$0xff] %v1043_v3  ;;  %v856_v60 = vmul.f32 %v2287_v26, %v3449_v48  ;;  %v904_v39 = vadd.f32 %v2287_v26, %v888_v14  ;;  %v872_v0 = vmul.f32 %v2343_v61, %v3445_v46  ;;  %v1189_v3 = vld [vmem:[#allocation17 + $0x38] sm:$0xff] (!%p2031_p0)  ;;  %v1190_v19 = vld [vmem:[#allocation17 + $0x40] sm:$0xff] (!%p2031_p0) }
 0x274   : > { %1123 = vst [vmem:[#allocation5 + $0x50] sm:$0xff] %v1107_v37  ;;  %918 = vst [vmem:[#allocation6 + $0x68] sm:$0xff] %v902_v33  ;;  %v1000_v4 = vadd.f32 %v2343_v61, %v984_v55  ;;  %v855_v7 = vmul.f32 %v671_v63, %v3447_v47  ;;  %v903_v8 = vadd.f32 %v887_v56, %v671_v63  ;;  %v1191_v33 = vld [vmem:[#allocation17 + $0x48] sm:$0xff] (!%p2031_p0)  ;;  %v1192_v43 = vld [vmem:[#allocation17 + $0x50] sm:$0xff] (!%p2031_p0) }
 0x275   : > { %1014 = vst [vmem:[#allocation8 + $0x68] sm:$0xff] %v998_v49  ;;  %917 = vst [vmem:[#allocation6 + $0x60] sm:$0xff] %v901_v51  ;;  %v952_v48 = vadd.f32 %v936_v59, %v856_v60  ;;  %v1080_v13 = vadd.f32 %v2287_v26, %v856_v60  ;;  %v871_v22 = vmul.f32 %v832_v10, %v3443_v45  ;;  %v1182_v45 = vld [vmem:[#allocation17] sm:$0xff] (!%p2031_p0)  ;;  %v1193_v44 = vld [vmem:[#allocation17 + $0x58] sm:$0xff] (!%p2031_p0) }
 0x276   : > { %966 = vst [vmem:[#allocation7 + $0x68] sm:$0xff] %v950_v42  ;;  %1094 = vst [vmem:[#allocation4 + $0x68] sm:$0xff] %v1078_v29  ;;  %v999_v17 = vadd.f32 %v983_v28, %v832_v10  ;;  %v1048_v18 = vadd.f32 %v1032_v62, %v872_v0  ;;  %v1112_v5 = vadd.f32 %v2343_v61, %v872_v0  ;;  %v1194_v1 = vld [vmem:[#allocation17 + $0x60] sm:$0xff] (!%p2031_p0)  ;;  %v1195_v49 = vld [vmem:[#allocation17 + $0x68] sm:$0xff] (!%p2031_p0) }
 0x277   : > { %1013 = vst [vmem:[#allocation8 + $0x60] sm:$0xff] %v997_v15  ;;  %1062 = vst [vmem:[#allocation9 + $0x68] sm:$0xff] %v1046_v57  ;;  %v951_v36 = vadd.f32 %v935_v25, %v855_v7  ;;  %v1079_v46 = vadd.f32 %v855_v7, %v671_v63  ;;  %v1047_v47 = vadd.f32 %v1031_v9, %v871_v22  ;;  %v1196_v51 = vld [vmem:[#allocation17 + $0x70] sm:$0xff] (!%p2031_p0)  ;;  %v1197_v52 = vld [vmem:[#allocation17 + $0x78] sm:$0xff] (!%p2031_p0) }
 0x278   : > { %1126 = vst [vmem:[#allocation5 + $0x68] sm:$0xff] %v1110_v40  ;;  %965 = vst [vmem:[#allocation7 + $0x60] sm:$0xff] %v949_v58  ;;  %v1111_v23 = vadd.f32 %v871_v22, %v832_v10  ;;  %v2632_v20 = vpack.c.bf16 (!%p2031_p0), %v1183_v6, %v1182_v45  ;;  %v2636_v21 = vpack.c.bf16 (!%p2031_p0), %v1185_v27, %v1184_v24  ;;  %v1150_v14 = vld [vmem:[#allocation16] sm:$0xff] (!%p2031_p0)  ;;  %v1151_v42 = vld [vmem:[#allocation16 + $0x8] sm:$0xff] (!%p2031_p0) }
 0x279   : > { %1093 = vst [vmem:[#allocation4 + $0x60] sm:$0xff] %v1077_v41  ;;  %1061 = vst [vmem:[#allocation9 + $0x60] sm:$0xff] %v1045_v11  ;;  %v2640_v35 = vpack.c.bf16 (!%p2031_p0), %v1187_v30, %v1186_v34  ;;  %v2644_v37 = vpack.c.bf16 (!%p2031_p0), %v1189_v3, %v1188_v32  ;;  %v2648_v38 = vpack.c.bf16 (!%p2031_p0), %v1191_v33, %v1190_v19  ;;  %v1152_v54 = vld [vmem:[#allocation16 + $0x10] sm:$0xff] (!%p2031_p0)  ;;  %v1153_v15 = vld [vmem:[#allocation16 + $0x18] sm:$0xff] (!%p2031_p0) }
 0x27a   : > { %1125 = vst [vmem:[#allocation5 + $0x60] sm:$0xff] %v1109_v12  ;;  %920 = vst [vmem:[#allocation6 + $0x78] sm:$0xff] %v904_v39  ;;  %1132 = sbr.rel (%p2031_p0) target bundleno = 944 (0x3b0), region = 68  ;;  %2633 = vmatprep.subr.bf16.mxu0 (!%p2031_p0), %v2632_v20  ;;  %2697 = vmatprep.subr.bf16.mxu1 (!%p2031_p0), %v2632_v20  ;;  %v2652_v16 = vpack.c.bf16 (!%p2031_p0), %v1193_v44, %v1192_v43  ;;  %v2656_v50 = vpack.c.bf16 (!%p2031_p0), %v1195_v49, %v1194_v1  ;;  %v1167_v55 = vld [vmem:[#allocation7 + $0x8] sm:$0xff] (!%p2031_p0)  ;;  %v1168_v57 = vld [vmem:[#allocation7 + $0x10] sm:$0xff] (!%p2031_p0) }
 0x27b   : > { %1016 = vst [vmem:[#allocation8 + $0x78] sm:$0xff] %v1000_v4  ;;  %919 = vst [vmem:[#allocation6 + $0x70] sm:$0xff] %v903_v8  ;;  %2635 = vmatpush3.bf16.msra.mxu0 (!%p2031_p0), %v2632_v20  ;;  %2699 = vmatpush3.bf16.msra.mxu1 (!%p2031_p0), %v2632_v20  ;;  %v2660_v53 = vpack.c.bf16 (!%p2031_p0), %v1197_v52, %v1196_v51  ;;  %v2664_v29 = vpack.c.bf16 (!%p2031_p0), %v1151_v42, %v1150_v14  ;;  %v1527_v56 = vld [vmem:[#allocation9 + $0x8] sm:$0xff] (!%p2031_p0)  ;;  %v1528_v40 = vld [vmem:[#allocation9 + $0x10] sm:$0xff] (!%p2031_p0) }
 0x27c   : > { %968 = vst [vmem:[#allocation7 + $0x78] sm:$0xff] %v952_v48  ;;  %1096 = vst [vmem:[#allocation4 + $0x78] sm:$0xff] %v1080_v13  ;;  %2637 = vmatprep.subr.bf16.mxu0 (!%p2031_p0), %v2636_v21  ;;  %2701 = vmatprep.subr.bf16.mxu1 (!%p2031_p0), %v2636_v21  ;;  %v2668_v58 = vpack.c.bf16 (!%p2031_p0), %v1153_v15, %v1152_v54  ;;  %v1154_v41 = vld [vmem:[#allocation16 + $0x20] sm:$0xff] (!%p2031_p0)  ;;  %v1155_v26 = vld [vmem:[#allocation16 + $0x28] sm:$0xff] (!%p2031_p0) }
 0x27d   : > { %1015 = vst [vmem:[#allocation8 + $0x70] sm:$0xff] %v999_v17  ;;  %1064 = vst [vmem:[#allocation9 + $0x78] sm:$0xff] %v1048_v18  ;;  %v1169_v59 = vld [vmem:[#allocation7 + $0x18] sm:$0xff] (!%p2031_p0)  ;;  %v1170_v11 = vld [vmem:[#allocation7 + $0x20] sm:$0xff] (!%p2031_p0)  ;;  %v2672_v60 = vpack.c.bf16 (!%p2031_p0), %v1155_v26, %v1154_v41 }
 0x27e   : > { %1128 = vst [vmem:[#allocation5 + $0x78] sm:$0xff] %v1112_v5  ;;  %967 = vst [vmem:[#allocation7 + $0x70] sm:$0xff] %v951_v36  ;;  %v1529_v28 = vld [vmem:[#allocation9 + $0x18] sm:$0xff] (!%p2031_p0)  ;;  %v1530_v12 = vld [vmem:[#allocation9 + $0x20] sm:$0xff] (!%p2031_p0) }
 0x27f   : > { %1095 = vst [vmem:[#allocation4 + $0x70] sm:$0xff] %v1079_v46  ;;  %1063 = vst [vmem:[#allocation9 + $0x70] sm:$0xff] %v1047_v47  ;;  %2639 = vmatpush3.bf16.msra.mxu0 (!%p2031_p0), %v2636_v21  ;;  %2703 = vmatpush3.bf16.msra.mxu1 (!%p2031_p0), %v2636_v21  ;;  %v1156_v39 = vld [vmem:[#allocation16 + $0x30] sm:$0xff] (!%p2031_p0)  ;;  %v1157_v61 = vld [vmem:[#allocation16 + $0x38] sm:$0xff] (!%p2031_p0) }
 0x280   : > { %1127 = vst [vmem:[#allocation5 + $0x70] sm:$0xff] %v1111_v23  ;;  %2641 = vmatprep.subr.bf16.mxu0 (!%p2031_p0), %v2640_v35  ;;  %2705 = vmatprep.subr.bf16.mxu1 (!%p2031_p0), %v2640_v35  ;;  %v1171_v62 = vld [vmem:[#allocation7 + $0x28] sm:$0xff] (!%p2031_p0)  ;;  %v1172_v25 = vld [vmem:[#allocation7 + $0x30] sm:$0xff] (!%p2031_p0)  ;;  %v2676_v4 = vpack.c.bf16 (!%p2031_p0), %v1157_v61, %v1156_v39  ;;  %v1158_v7 = vld [vmem:[#allocation16 + $0x40] sm:$0xff] (!%p2031_p0) }
 0x281   : > { %v1531_v63 = vld [vmem:[#allocation9 + $0x28] sm:$0xff]  ;;  %v1532_v0 = vld [vmem:[#allocation9 + $0x30] sm:$0xff]  ;;  %v1173_v10 = vld [vmem:[#allocation7 + $0x38] sm:$0xff] }
 0x282   : > { %v1159_v8 = vld [vmem:[#allocation16 + $0x48] sm:$0xff]  ;;  %v1533_v9 = vld [vmem:[#allocation9 + $0x38] sm:$0xff]  ;;  %v1174_v48 = vld [vmem:[#allocation7 + $0x40] sm:$0xff] }
 0x283   : > { %2643 = vmatpush3.bf16.msra.mxu0 %v2640_v35  ;;  %2707 = vmatpush3.bf16.msra.mxu1 %v2640_v35  ;;  %v1534_v13 = vld [vmem:[#allocation9 + $0x40] sm:$0xff]  ;;  %v2680_v22 = vpack.c.bf16 %v1159_v8, %v1158_v7  ;;  %v1160_v17 = vld [vmem:[#allocation16 + $0x50] sm:$0xff]  ;;  %v1161_v18 = vld [vmem:[#allocation16 + $0x58] sm:$0xff] }
 0x284   : > { %2645 = vmatprep.subr.bf16.mxu0 %v2644_v37  ;;  %2709 = vmatprep.subr.bf16.mxu1 %v2644_v37  ;;  %v1175_v5 = vld [vmem:[#allocation7 + $0x48] sm:$0xff]  ;;  %v1176_v46 = vld [vmem:[#allocation7 + $0x50] sm:$0xff]  ;;  %v2684_v23 = vpack.c.bf16 %v1161_v18, %v1160_v17  ;;  %v1162_v45 = vld [vmem:[#allocation16 + $0x60] sm:$0xff] }
 0x285   : > { %v1535_v36 = vld [vmem:[#allocation9 + $0x48] sm:$0xff]  ;;  %v1536_v47 = vld [vmem:[#allocation9 + $0x50] sm:$0xff]  ;;  %v1177_v24 = vld [vmem:[#allocation7 + $0x58] sm:$0xff] }
 0x286   : > { %v1163_v6 = vld [vmem:[#allocation16 + $0x68] sm:$0xff]  ;;  %v1537_v20 = vld [vmem:[#allocation9 + $0x58] sm:$0xff]  ;;  %v1178_v27 = vld [vmem:[#allocation7 + $0x60] sm:$0xff] }
 0x287   : > { %2647 = vmatpush3.bf16.msra.mxu0 %v2644_v37  ;;  %2711 = vmatpush3.bf16.msra.mxu1 %v2644_v37  ;;  %v1538_v21 = vld [vmem:[#allocation9 + $0x60] sm:$0xff]  ;;  %v2688_v34 = vpack.c.bf16 %v1163_v6, %v1162_v45  ;;  %v1164_v30 = vld [vmem:[#allocation16 + $0x70] sm:$0xff]  ;;  %v1165_v35 = vld [vmem:[#allocation16 + $0x78] sm:$0xff] }
 0x288   : > { %2649 = vmatprep.subr.bf16.mxu0 %v2648_v38  ;;  %2713 = vmatprep.subr.bf16.mxu1 %v2648_v38  ;;  %v1179_v2 = vld [vmem:[#allocation7 + $0x68] sm:$0xff]  ;;  %v1180_v32 = vld [vmem:[#allocation7 + $0x70] sm:$0xff]  ;;  %v2692_v37 = vpack.c.bf16 %v1165_v35, %v1164_v30  ;;  %v1181_v19 = vld [vmem:[#allocation7 + $0x78] sm:$0xff] }
 0x289   : > { %v1539_v31 = vld [vmem:[#allocation9 + $0x68] sm:$0xff]  ;;  %v1540_v3 = vld [vmem:[#allocation9 + $0x70] sm:$0xff]  ;;  %v1541_v33 = vld [vmem:[#allocation9 + $0x78] sm:$0xff] }
 0x28a   : > { %v1510_v43 = vld [vmem:[#allocation8] sm:$0xff]  ;;  %v1135_v44 = vld [vmem:[#allocation6 + $0x8] sm:$0xff]  ;;  %v1136_v1 = vld [vmem:[#allocation6 + $0x10] sm:$0xff] }
 0x28b   : > { %2651 = vmatpush3.bf16.msra.mxu0 %v2648_v38  ;;  %2715 = vmatpush3.bf16.msra.mxu1 %v2648_v38  ;;  %v1134_v38 = vld [vmem:[#allocation6] sm:$0xff]  ;;  %v1512_v49 = vld [vmem:[#allocation8 + $0x10] sm:$0xff]  ;;  %v1513_v51 = vld [vmem:[#allocation8 + $0x18] sm:$0xff] }
 0x28c   : > { %2653 = vmatprep.subr.bf16.mxu0 %v2652_v16  ;;  %2717 = vmatprep.subr.bf16.mxu1 %v2652_v16  ;;  %v1138_v52 = vld [vmem:[#allocation6 + $0x20] sm:$0xff]  ;;  %v1139_v14 = vld [vmem:[#allocation6 + $0x28] sm:$0xff]  ;;  %v1516_v54 = vld [vmem:[#allocation8 + $0x30] sm:$0xff] }
 0x28d   : > { %v1515_v42 = vld [vmem:[#allocation8 + $0x28] sm:$0xff]  ;;  %v1141_v15 = vld [vmem:[#allocation6 + $0x38] sm:$0xff]  ;;  %v1144_v41 = vld [vmem:[#allocation6 + $0x50] sm:$0xff] }
 0x28e   : > { %v1520_v26 = vld [vmem:[#allocation8 + $0x50] sm:$0xff]  ;;  %v1523_v39 = vld [vmem:[#allocation8 + $0x68] sm:$0xff] }
 0x28f   : > { %2655 = vmatpush3.bf16.msra.mxu0 %v2652_v16  ;;  %2719 = vmatpush3.bf16.msra.mxu1 %v2652_v16  ;;  %v1511_v16 = vld [vmem:[#allocation8 + $0x8] sm:$0xff]  ;;  %v1148_v61 = vld [vmem:[#allocation6 + $0x70] sm:$0xff] }
 0x290   : > { %2657 = vmatprep.subr.bf16.mxu0 %v2656_v50  ;;  %2721 = vmatprep.subr.bf16.mxu1 %v2656_v50 }
 0x293   : > { %2659 = vmatpush3.bf16.msra.mxu0 %v2656_v50  ;;  %2723 = vmatpush3.bf16.msra.mxu1 %v2656_v50  ;;  %v1137_v50 = vld [vmem:[#allocation6 + $0x18] sm:$0xff] }
 0x294   : > { %2661 = vmatprep.subr.bf16.mxu0 %v2660_v53  ;;  %2725 = vmatprep.subr.bf16.mxu1 %v2660_v53 }
 0x297   : > { %2663 = vmatpush3.bf16.msra.mxu0 %v2660_v53  ;;  %2727 = vmatpush3.bf16.msra.mxu1 %v2660_v53  ;;  %v1514_v53 = vld [vmem:[#allocation8 + $0x20] sm:$0xff] }
 0x298   : > { %2665 = vmatprep.subr.bf16.mxu0 %v2664_v29  ;;  %2729 = vmatprep.subr.bf16.mxu1 %v2664_v29 }
 0x29a   : > { %2377 = vmatmul.mubr.f32.vlgmr.msra.gmra.mrb[0].mxu0 %v1167_v55  ;;  %2489 = vmatmul.mubr.f32.vlgmr.msra.gmra.mrb[0].mxu1 %v1527_v56  ;;  %v1517_v55 = vld [vmem:[#allocation8 + $0x38] sm:$0xff]  ;;  %v1142_v56 = vld [vmem:[#allocation6 + $0x40] sm:$0xff] }
 0x29b   : > { %2667 = vmatpush3.bf16.msra.mxu0 %v2664_v29  ;;  %2731 = vmatpush3.bf16.msra.mxu1 %v2664_v29  ;;  %v1140_v29 = vld [vmem:[#allocation6 + $0x30] sm:$0xff] }
 0x29c   : > { %2379 = vmatprep.mubr.f32.mxu0 %v1168_v57  ;;  %2491 = vmatprep.mubr.f32.mxu1 %v1528_v40  ;;  %v1518_v57 = vld [vmem:[#allocation8 + $0x40] sm:$0xff]  ;;  %v1143_v40 = vld [vmem:[#allocation6 + $0x48] sm:$0xff] }
 0x29d   : > { %2669 = vmatprep.subr.bf16.mxu0 %v2668_v58  ;;  %2733 = vmatprep.subr.bf16.mxu1 %v2668_v58 }
 0x29e   : > { %2380 = vmatmul.mubr.f32.gmra.mrb[2].mxu0 %v1169_v59  ;;  %2492 = vmatmul.mubr.f32.gmra.mrb[2].mxu1 %v1529_v28  ;;  %v1145_v59 = vld [vmem:[#allocation6 + $0x58] sm:$0xff] }
 0x29f   : > { %2671 = vmatpush3.bf16.msra.mxu0 %v2668_v58  ;;  %2735 = vmatpush3.bf16.msra.mxu1 %v2668_v58  ;;  %v1519_v58 = vld [vmem:[#allocation8 + $0x48] sm:$0xff]  ;;  %v1521_v28 = vld [vmem:[#allocation8 + $0x58] sm:$0xff] }
 0x2a0   : > { %2382 = vmatprep.mubr.f32.mxu0 %v1170_v11  ;;  %2494 = vmatprep.mubr.f32.mxu1 %v1530_v12  ;;  %v1146_v11 = vld [vmem:[#allocation6 + $0x60] sm:$0xff] }
 0x2a1   : > { %2673 = vmatprep.subr.bf16.mxu0 %v2672_v60  ;;  %2737 = vmatprep.subr.bf16.mxu1 %v2672_v60  ;;  %v1522_v12 = vld [vmem:[#allocation8 + $0x60] sm:$0xff] }
 0x2a2   : > { %2383 = vmatmul.mubr.f32.gmra.mrb[4].mxu0 %v1171_v62  ;;  %2495 = vmatmul.mubr.f32.gmra.mrb[4].mxu1 %v1531_v63  ;;  %v1524_v62 = vld [vmem:[#allocation8 + $0x70] sm:$0xff]  ;;  %v1149_v63 = vld [vmem:[#allocation6 + $0x78] sm:$0xff] }
 0x2a3   : > { %2675 = vmatpush3.bf16.msra.mxu0 %v2672_v60  ;;  %2739 = vmatpush3.bf16.msra.mxu1 %v2672_v60  ;;  %v1147_v60 = vld [vmem:[#allocation6 + $0x68] sm:$0xff] }
 0x2a4   : > { %2385 = vmatprep.mubr.f32.mxu0 %v1172_v25  ;;  %2497 = vmatprep.mubr.f32.mxu1 %v1532_v0  ;;  %v1525_v25 = vld [vmem:[#allocation8 + $0x78] sm:$0xff]  ;;  %v3491_v0 = vld [vmem:[%s3578_s5] ss:$0 sm:$0xff] }
 0x2a5   : > { %2677 = vmatprep.subr.bf16.mxu0 %v2676_v4  ;;  %2741 = vmatprep.subr.bf16.mxu1 %v2676_v4 }
 0x2a6   : > { %2386 = vmatmul.mubr.f32.gmra.mrb[6].mxu0 %v1173_v10  ;;  %2498 = vmatmul.mubr.f32.gmra.mrb[6].mxu1 %v1533_v9 }
 0x2a7   : > { %2679 = vmatpush3.bf16.msra.mxu0 %v2676_v4  ;;  %2743 = vmatpush3.bf16.msra.mxu1 %v2676_v4 }
 0x2a8   : > { %2388 = vmatprep.mubr.f32.mxu0 %v1174_v48  ;;  %2500 = vmatprep.mubr.f32.mxu1 %v1534_v13 }
 0x2a9   : > { %2681 = vmatprep.subr.bf16.mxu0 %v2680_v22  ;;  %2745 = vmatprep.subr.bf16.mxu1 %v2680_v22 }
 0x2aa   : > { %2389 = vmatmul.mubr.f32.gmra.mrb[8].mxu0 %v1175_v5  ;;  %2501 = vmatmul.mubr.f32.gmra.mrb[8].mxu1 %v1535_v36 }
 0x2ab   : > { %2683 = vmatpush3.bf16.msra.mxu0 %v2680_v22  ;;  %2747 = vmatpush3.bf16.msra.mxu1 %v2680_v22 }
 0x2ac   : > { %2391 = vmatprep.mubr.f32.mxu0 %v1176_v46  ;;  %2503 = vmatprep.mubr.f32.mxu1 %v1536_v47 }
 0x2ad   : > { %2685 = vmatprep.subr.bf16.mxu0 %v2684_v23  ;;  %2749 = vmatprep.subr.bf16.mxu1 %v2684_v23 }
 0x2ae   : > { %2392 = vmatmul.mubr.f32.gmra.mrb[10].mxu0 %v1177_v24  ;;  %2504 = vmatmul.mubr.f32.gmra.mrb[10].mxu1 %v1537_v20 }
 0x2af   : > { %2687 = vmatpush3.bf16.msra.mxu0 %v2684_v23  ;;  %2751 = vmatpush3.bf16.msra.mxu1 %v2684_v23 }
 0x2b0   : > { %2394 = vmatprep.mubr.f32.mxu0 %v1178_v27  ;;  %2506 = vmatprep.mubr.f32.mxu1 %v1538_v21 }
 0x2b1   : > { %2689 = vmatprep.subr.bf16.mxu0 %v2688_v34  ;;  %2753 = vmatprep.subr.bf16.mxu1 %v2688_v34 }
 0x2b2   : > { %2395 = vmatmul.mubr.f32.gmra.mrb[12].mxu0 %v1179_v2  ;;  %2507 = vmatmul.mubr.f32.gmra.mrb[12].mxu1 %v1539_v31 }
 0x2b3   : > { %2691 = vmatpush3.bf16.msra.mxu0 %v2688_v34  ;;  %2755 = vmatpush3.bf16.msra.mxu1 %v2688_v34 }
 0x2b4   : > { %2397 = vmatprep.mubr.f32.mxu0 %v1180_v32  ;;  %2509 = vmatprep.mubr.f32.mxu1 %v1540_v3 }
 0x2b5   : > { %2693 = vmatprep.subr.bf16.mxu0 %v2692_v37  ;;  %2757 = vmatprep.subr.bf16.mxu1 %v2692_v37 }
 0x2b6   : > { %2398 = vmatmul.mubr.f32.gmra.mrb[14].mxu0 %v1181_v19  ;;  %2510 = vmatmul.mubr.f32.gmra.mrb[14].mxu1 %v1541_v33 }
 0x2b7   : > { %2695 = vmatpush3.bf16.msra.mxu0 %v2692_v37  ;;  %2759 = vmatpush3.bf16.msra.mxu1 %v2692_v37 }
 0x2b8   : > { %2432 = vmatprep.mubr.f32.mxu0 %v1134_v38  ;;  %2544 = vmatprep.mubr.f32.mxu1 %v1510_v43 }
 0x2ba   : > { %2433 = vmatmul.mubr.f32.vlgmr.msra.gmra.mrb[0].mxu0 %v1135_v44  ;;  %2545 = vmatmul.mubr.f32.vlgmr.msra.gmra.mrb[0].mxu1 %v1511_v16 }
 0x2bb   : > { %2435 = vmatprep.mubr.f32.mxu0 %v1136_v1  ;;  %2547 = vmatprep.mubr.f32.mxu1 %v1512_v49 }
 0x2be   : > { %2436 = vmatmul.mubr.f32.gmra.mrb[2].mxu0 %v1137_v50  ;;  %2548 = vmatmul.mubr.f32.gmra.mrb[2].mxu1 %v1513_v51 }
 0x2bf   : > { %2438 = vmatprep.mubr.f32.mxu0 %v1138_v52  ;;  %2550 = vmatprep.mubr.f32.mxu1 %v1514_v53 }
 0x2c2   : > { %2439 = vmatmul.mubr.f32.gmra.mrb[4].mxu0 %v1139_v14  ;;  %2551 = vmatmul.mubr.f32.gmra.mrb[4].mxu1 %v1515_v42 }
 0x2c3   : > { %2441 = vmatprep.mubr.f32.mxu0 %v1140_v29  ;;  %2553 = vmatprep.mubr.f32.mxu1 %v1516_v54 }
 0x2c6   : > { %2442 = vmatmul.mubr.f32.gmra.mrb[6].mxu0 %v1141_v15  ;;  %2554 = vmatmul.mubr.f32.gmra.mrb[6].mxu1 %v1517_v55 }
 0x2c7   : > { %2444 = vmatprep.mubr.f32.mxu0 %v1142_v56  ;;  %2556 = vmatprep.mubr.f32.mxu1 %v1518_v57 }
 0x2ca   : > { %2445 = vmatmul.mubr.f32.gmra.mrb[8].mxu0 %v1143_v40  ;;  %2557 = vmatmul.mubr.f32.gmra.mrb[8].mxu1 %v1519_v58 }
 0x2cb   : > { %2447 = vmatprep.mubr.f32.mxu0 %v1144_v41  ;;  %2559 = vmatprep.mubr.f32.mxu1 %v1520_v26 }
 0x2ce   : > { %2448 = vmatmul.mubr.f32.gmra.mrb[10].mxu0 %v1145_v59  ;;  %2560 = vmatmul.mubr.f32.gmra.mrb[10].mxu1 %v1521_v28 }
 0x2cf   : > { %2450 = vmatprep.mubr.f32.mxu0 %v1146_v11  ;;  %2562 = vmatprep.mubr.f32.mxu1 %v1522_v12 }
 0x2d2   : > { %2451 = vmatmul.mubr.f32.gmra.mrb[12].mxu0 %v1147_v60  ;;  %2563 = vmatmul.mubr.f32.gmra.mrb[12].mxu1 %v1523_v39 }
 0x2d3   : > { %2453 = vmatprep.mubr.f32.mxu0 %v1148_v61  ;;  %2565 = vmatprep.mubr.f32.mxu1 %v1524_v62 }
 0x2d6   : > { %2454 = vmatmul.mubr.f32.gmra.mrb[14].mxu0 %v1149_v63  ;;  %2566 = vmatmul.mubr.f32.gmra.mrb[14].mxu1 %v1525_v25 }
 0x38d   : > { %v2434_v4 = vpop.f32.mrb[0].mxu0  ;;  %v2546_v7 = vpop.f32.mrb[0].mxu1 }
 0x38e   : > { %v1495_v8 = vadd.f32 %v2434_v4, %v3491_v0  ;;  %v1833_v10 = vadd.f32 %v2546_v7, %v3491_v0  ;;  %v1409_v9 = vpop.f32.mrb[1].mxu0  ;;  %v1753_v48 = vpop.f32.mrb[1].mxu1 }
 0x38f   : > { %v1494_v13 = vadd.f32 %v3491_v0, %v1409_v9  ;;  %v1832_v22 = vadd.f32 %v3491_v0, %v1753_v48 }
 0x390   : > { %v1849_v17 = vmax.f32 %v1495_v8, 0.0  ;;  %v1865_v18 = vmax.f32 %v1833_v10, 0.0 }
 0x391   : > { %v1848_v5 = vmax.f32 %v1494_v13, 0.0  ;;  %v1864_v36 = vmax.f32 %v1832_v22, 0.0  ;;  %v2437_v46 = vpop.f32.mrb[2].mxu0  ;;  %v2549_v47 = vpop.f32.mrb[2].mxu1 }
 0x392   : > { %1881 = vst [vmem:[#allocation19 + $0x8] sm:$0xff] %v1849_v17  ;;  %1897 = vst [vmem:[#allocation20 + $0x8] sm:$0xff] %v1865_v18  ;;  %v1497_v23 = vadd.f32 %v2437_v46, %v3491_v0  ;;  %v1835_v45 = vadd.f32 %v2549_v47, %v3491_v0  ;;  %v1419_v6 = vpop.f32.mrb[3].mxu0  ;;  %v1763_v24 = vpop.f32.mrb[3].mxu1 }
 0x393   : > { %1880 = vst [vmem:[#allocation19] sm:$0xff] %v1848_v5  ;;  %1896 = vst [vmem:[#allocation20] sm:$0xff] %v1864_v36  ;;  %v1496_v20 = vadd.f32 %v3491_v0, %v1419_v6  ;;  %v1834_v27 = vadd.f32 %v3491_v0, %v1763_v24 }
 0x394   : > { %v1851_v21 = vmax.f32 %v1497_v23, 0.0  ;;  %v1867_v34 = vmax.f32 %v1835_v45, 0.0 }
 0x395   : > { %v1850_v30 = vmax.f32 %v1496_v20, 0.0  ;;  %v1866_v35 = vmax.f32 %v1834_v27, 0.0  ;;  %v2440_v2 = vpop.f32.mrb[4].mxu0  ;;  %v2552_v31 = vpop.f32.mrb[4].mxu1 }
 0x396   : > { %1883 = vst [vmem:[#allocation19 + $0x18] sm:$0xff] %v1851_v21  ;;  %1899 = vst [vmem:[#allocation20 + $0x18] sm:$0xff] %v1867_v34  ;;  %v1499_v32 = vadd.f32 %v2440_v2, %v3491_v0  ;;  %v1837_v3 = vadd.f32 %v2552_v31, %v3491_v0  ;;  %v1429_v37 = vpop.f32.mrb[5].mxu0  ;;  %v1773_v19 = vpop.f32.mrb[5].mxu1 }
 0x397   : > { %1882 = vst [vmem:[#allocation19 + $0x10] sm:$0xff] %v1850_v30  ;;  %1898 = vst [vmem:[#allocation20 + $0x10] sm:$0xff] %v1866_v35  ;;  %v1498_v33 = vadd.f32 %v3491_v0, %v1429_v37  ;;  %v1836_v38 = vadd.f32 %v3491_v0, %v1773_v19 }
 0x398   : > { %v1853_v43 = vmax.f32 %v1499_v32, 0.0  ;;  %v1869_v44 = vmax.f32 %v1837_v3, 0.0 }
 0x399   : > { %v1852_v16 = vmax.f32 %v1498_v33, 0.0  ;;  %v1868_v1 = vmax.f32 %v1836_v38, 0.0  ;;  %v2443_v49 = vpop.f32.mrb[6].mxu0  ;;  %v2555_v50 = vpop.f32.mrb[6].mxu1 }
 0x39a   : > { %1885 = vst [vmem:[#allocation19 + $0x28] sm:$0xff] %v1853_v43  ;;  %1901 = vst [vmem:[#allocation20 + $0x28] sm:$0xff] %v1869_v44  ;;  %v1501_v51 = vadd.f32 %v2443_v49, %v3491_v0  ;;  %v1839_v52 = vadd.f32 %v2555_v50, %v3491_v0  ;;  %v1439_v53 = vpop.f32.mrb[7].mxu0  ;;  %v1783_v14 = vpop.f32.mrb[7].mxu1 }
 0x39b   : > { %1884 = vst [vmem:[#allocation19 + $0x20] sm:$0xff] %v1852_v16  ;;  %1900 = vst [vmem:[#allocation20 + $0x20] sm:$0xff] %v1868_v1  ;;  %v1500_v42 = vadd.f32 %v3491_v0, %v1439_v53  ;;  %v1838_v29 = vadd.f32 %v3491_v0, %v1783_v14 }
 0x39c   : > { %v1855_v54 = vmax.f32 %v1501_v51, 0.0  ;;  %v1871_v15 = vmax.f32 %v1839_v52, 0.0 }
 0x39d   : > { %v1854_v55 = vmax.f32 %v1500_v42, 0.0  ;;  %v1870_v56 = vmax.f32 %v1838_v29, 0.0  ;;  %v2446_v57 = vpop.f32.mrb[8].mxu0  ;;  %v2558_v40 = vpop.f32.mrb[8].mxu1 }
 0x39e   : > { %1887 = vst [vmem:[#allocation19 + $0x38] sm:$0xff] %v1855_v54  ;;  %1903 = vst [vmem:[#allocation20 + $0x38] sm:$0xff] %v1871_v15  ;;  %v1503_v58 = vadd.f32 %v2446_v57, %v3491_v0  ;;  %v1841_v41 = vadd.f32 %v2558_v40, %v3491_v0  ;;  %v1449_v26 = vpop.f32.mrb[9].mxu0  ;;  %v1793_v59 = vpop.f32.mrb[9].mxu1 }
 0x39f   : > { %1886 = vst [vmem:[#allocation19 + $0x30] sm:$0xff] %v1854_v55  ;;  %1902 = vst [vmem:[#allocation20 + $0x30] sm:$0xff] %v1870_v56  ;;  %v1502_v28 = vadd.f32 %v3491_v0, %v1449_v26  ;;  %v1840_v11 = vadd.f32 %v3491_v0, %v1793_v59 }
 0x3a0   : > { %v1857_v12 = vmax.f32 %v1503_v58, 0.0  ;;  %v1873_v60 = vmax.f32 %v1841_v41, 0.0 }
 0x3a1   : > { %v1856_v39 = vmax.f32 %v1502_v28, 0.0  ;;  %v1872_v61 = vmax.f32 %v1840_v11, 0.0  ;;  %v2449_v62 = vpop.f32.mrb[10].mxu0  ;;  %v2561_v63 = vpop.f32.mrb[10].mxu1 }
 0x3a2   : > { %1889 = vst [vmem:[#allocation19 + $0x48] sm:$0xff] %v1857_v12  ;;  %1905 = vst [vmem:[#allocation20 + $0x48] sm:$0xff] %v1873_v60  ;;  %v1505_v25 = vadd.f32 %v2449_v62, %v3491_v0  ;;  %v1843_v4 = vadd.f32 %v2561_v63, %v3491_v0  ;;  %v1459_v7 = vpop.f32.mrb[11].mxu0  ;;  %v1803_v8 = vpop.f32.mrb[11].mxu1 }
 0x3a3   : > { %1888 = vst [vmem:[#allocation19 + $0x40] sm:$0xff] %v1856_v39  ;;  %1904 = vst [vmem:[#allocation20 + $0x40] sm:$0xff] %v1872_v61  ;;  %v1504_v10 = vadd.f32 %v3491_v0, %v1459_v7  ;;  %v1842_v9 = vadd.f32 %v3491_v0, %v1803_v8 }
 0x3a4   : > { %v1859_v48 = vmax.f32 %v1505_v25, 0.0  ;;  %v1875_v13 = vmax.f32 %v1843_v4, 0.0 }
 0x3a5   : > { %v1858_v22 = vmax.f32 %v1504_v10, 0.0  ;;  %v1874_v17 = vmax.f32 %v1842_v9, 0.0  ;;  %v2452_v18 = vpop.f32.mrb[12].mxu0  ;;  %v2564_v5 = vpop.f32.mrb[12].mxu1 }
 0x3a6   : > { %1891 = vst [vmem:[#allocation19 + $0x58] sm:$0xff] %v1859_v48  ;;  %1907 = vst [vmem:[#allocation20 + $0x58] sm:$0xff] %v1875_v13  ;;  %v1507_v36 = vadd.f32 %v2452_v18, %v3491_v0  ;;  %v1845_v46 = vadd.f32 %v2564_v5, %v3491_v0  ;;  %v1469_v47 = vpop.f32.mrb[13].mxu0  ;;  %v1813_v23 = vpop.f32.mrb[13].mxu1 }
 0x3a7   : > { %1890 = vst [vmem:[#allocation19 + $0x50] sm:$0xff] %v1858_v22  ;;  %1906 = vst [vmem:[#allocation20 + $0x50] sm:$0xff] %v1874_v17  ;;  %v1506_v45 = vadd.f32 %v3491_v0, %v1469_v47  ;;  %v1844_v6 = vadd.f32 %v3491_v0, %v1813_v23 }
 0x3a8   : > { %v1861_v24 = vmax.f32 %v1507_v36, 0.0  ;;  %v1877_v20 = vmax.f32 %v1845_v46, 0.0 }
 0x3a9   : > { %v1860_v27 = vmax.f32 %v1506_v45, 0.0  ;;  %v1876_v21 = vmax.f32 %v1844_v6, 0.0  ;;  %v2455_v34 = vpop.f32.mrb[14].mxu0  ;;  %v2567_v30 = vpop.f32.mrb[14].mxu1 }
 0x3aa   : > { %1893 = vst [vmem:[#allocation19 + $0x68] sm:$0xff] %v1861_v24  ;;  %1909 = vst [vmem:[#allocation20 + $0x68] sm:$0xff] %v1877_v20  ;;  %v1509_v35 = vadd.f32 %v2455_v34, %v3491_v0  ;;  %v1847_v2 = vadd.f32 %v2567_v30, %v3491_v0  ;;  %v1479_v31 = vpop.f32.mrb[15].mxu0  ;;  %v1823_v32 = vpop.f32.mrb[15].mxu1 }
 0x3ab   : > { %1892 = vst [vmem:[#allocation19 + $0x60] sm:$0xff] %v1860_v27  ;;  %1908 = vst [vmem:[#allocation20 + $0x60] sm:$0xff] %v1876_v21  ;;  %v1508_v3 = vadd.f32 %v3491_v0, %v1479_v31  ;;  %v1846_v37 = vadd.f32 %v3491_v0, %v1823_v32 }
 0x3ac   : > { %v1863_v19 = vmax.f32 %v1509_v35, 0.0  ;;  %v1879_v33 = vmax.f32 %v1847_v2, 0.0 }
 0x3ad   : > { %v1862_v38 = vmax.f32 %v1508_v3, 0.0  ;;  %v1878_v43 = vmax.f32 %v1846_v37, 0.0 }
 0x3ae   : > { %1895 = vst [vmem:[#allocation19 + $0x78] sm:$0xff] %v1863_v19  ;;  %1911 = vst [vmem:[#allocation20 + $0x78] sm:$0xff] %v1879_v33 }
 0x3af   : > { %1894 = vst [vmem:[#allocation19 + $0x70] sm:$0xff] %v1862_v38  ;;  %1910 = vst [vmem:[#allocation20 + $0x70] sm:$0xff] %v1878_v43 }
 0x3b0 PF: > { %p2837_p3 = scmp.eq.s32.totalorder %s3135_s25, 1  ;;  %s3085_s20 = smov [#allocation19]  }
 0x3b1   : > { %s1918_s21 = sshll.u32 %s3085_s20, 4  ;;  %s1919_s21 = int_to_ptr.vmem [resolvable:$true] %s1918_s21 }
 0x3b2   : > { %s2995_s27 = scalar_lea.vmem %s1919_s21, 2048  ;;  %p3002_p5 = scmp.lt.s32.totalorder %s1919_s21, %s1919_s21 }
 0x3b3   : > { %p2996_p4 = scmp.ne.s32.totalorder %s1919_s21, %s2995_s27  ;;  %p3003_p7 = scmp.lt.s32.totalorder %s2995_s27, %s2995_s27 }
 0x3b5   : > { %p2997_p1 = pnand %p2996_p4, %p2837_p3  ;;  %p3004_p9 = por %p3003_p7, %p3002_p5 }
 0x3b7   : > { %p2998_p6 = pneg %p2997_p1 }
 0x3b9   : > { %p3005_p2 = pnand %p3004_p9, %p2998_p6 }
 0x3bb   : > { %3008 = shalt.err (!%p3005_p2)
}
 0x3bc   : > { %s3009_s10 = scalar_lea.hbm %s3579_s6, 2048 }
 0x3bd   : > { %p3010_p10 = scmp.ne.s32.totalorder %s3579_s6, %s3009_s10  ;;  %p3015_p13 = scmp.lt.u32.totalorder %s3009_s10, %s3579_s6 }
 0x3bf   : > { %p3011_p11 = pnand %p3010_p10, %p2837_p3 }
 0x3c1   : > { %p3012_p12 = pneg %p3011_p11 }
 0x3c3   : > { %p3017_p8 = pnand %p3015_p13, %p3012_p12 }
 0x3c5   : > { %3020 = shalt.err (!%p3017_p8)
}
 0x3c6   : > { %s3086_s18 = smov 128   ;;  %s3087_s22 = smov 8  }
 0x3c7   : > { %2809 = dma.vmem_to_hbm [thread:$0]  (%p2837_p3), %s1919_s21, 2048, %s3579_s6, [#allocation13], %s3086_s18, %s3086_s18, %s3087_s22  }
 0x3c8   : > { %s3088_s14 = smov [#allocation20]  }
 0x3c9   : > { %s1931_s30 = sshll.u32 %s3088_s14, 4  ;;  %s1932_s30 = int_to_ptr.vmem [resolvable:$true] %s1931_s30 }
 0x3ca   : > { %s3021_s15 = scalar_lea.vmem %s1932_s30, 2048  ;;  %p3028_p6 = scmp.lt.s32.totalorder %s1932_s30, %s1932_s30 }
 0x3cb   : > { %p3022_p0 = scmp.ne.s32.totalorder %s1932_s30, %s3021_s15  ;;  %p3029_p5 = scmp.lt.s32.totalorder %s3021_s15, %s3021_s15 }
 0x3cd   : > { %p3023_p4 = pnand %p3022_p0, %p2837_p3  ;;  %p3030_p7 = por %p3029_p5, %p3028_p6 }
 0x3cf   : > { %p3024_p1 = pneg %p3023_p4 }
 0x3d1   : > { %p3031_p9 = pnand %p3030_p7, %p3024_p1 }
 0x3d3   : > { %3034 = shalt.err (!%p3031_p9)
}
 0x3d4   : > { %s3035_s28 = scalar_lea.hbm %s3580_s7, 2048 }
 0x3d5   : > { %p3036_p2 = scmp.ne.s32.totalorder %s3580_s7, %s3035_s28  ;;  %p3041_p12 = scmp.lt.u32.totalorder %s3035_s28, %s3580_s7 }
 0x3d7   : > { %p3037_p10 = pnand %p3036_p2, %p2837_p3 }
 0x3d9   : > { %p3038_p11 = pneg %p3037_p10 }
 0x3db   : > { %p3043_p13 = pnand %p3041_p12, %p3038_p11 }
 0x3dd   : > { %3046 = shalt.err (!%p3043_p13)
}
 0x3de   : > { %2811 = dma.vmem_to_hbm [thread:$0]  (%p2837_p3), %s1932_s30, 2048, %s3580_s7, [#allocation21], %s3086_s18, %s3086_s18, %s3087_s22  }
 0x3df   : > { %3066 = dma.done.wait (%p2837_p3), [#allocation13], 2048  }
 0x3e0   : > { %3068 = vsyncadd (%p2837_p3), [#allocation13], 4294965248 }
 0x3e1   : > { %3070 = dma.done.wait (%p2837_p3), [#allocation21], 2048  }
 0x3e2   : > { %3072 = vsyncadd (%p2837_p3), [#allocation21], 4294965248 }
 0x3e3 PF: > { %s23_s24 = sadd.s32 1, %s3075_s24  }
 0x3e4   : > { %p20_p8 = scmp.ge.s32.totalorder %s23_s24, 4  }
 0x3e6   :  { %22 = sbr.rel (!%p20_p8) target bundleno = 5 (0x5), region = 101 }
 0x3ed   :  { %1951 = vsyncpa [#allocation12], 1 }
 0x3ee   :  { %1953 = vsyncpa [#allocation12 + $0x1], 1 }
 0x3ef   :  { %1954 = vsyncpa [#allocation15], 1 }
 0x3f0   :  { %1955 = vsyncpa [#allocation18], 1 }
 0x3f1   :  { %1956 = vsyncpa [#allocation13], 1 }
 0x3f2   :  { %1958 = vsyncpa [#allocation13 + $0x1], 1 }
 0x3f3   :  { %1959 = vsyncpa [#allocation21], 1 }
 0x3f4   :  { %1960 = vsyncmov [#allocation10] }
 0x3f7   :  { %s1961_s10 = vpop.sfrf %1960 }
 0x3f8   :  { %p2039_p0 = scmp.ne.s32.totalorder %s1961_s10, 0 }
 0x3fa   :  { %1965 = shalt.err (%p2039_p0)  }

</bundles_post_ra>
